<compile_context>
chip_gen: v6e
topology: v6e:2x2x1
jax: 0.10.0
libtpu: 0.0.40
codegen_flags: <defaults>
</compile_context>

<pallas_src>
import functools

import jax
import jax.numpy as jnp
import numpy as np
from jax.experimental import pallas as pl
from jax.experimental.pallas import tpu as pltpu


def _dilate_attn_kernel(mask_ref, q_ref, k_ref, v_ref, o_ref, *,
                        H, W, K, dil, scale, needs_mask):
    # Block shapes (lane-dense, flattened spatial L = H*W):
    #   q_ref, k_ref, v_ref, o_ref : (TB, head_dim, L)  (unpadded)
    #   mask_ref                   : (K*K, L) f32 per-tap validity masks
    L = H * W
    pad = dil * (K - 1) // 2
    TB, hd, _ = o_ref.shape

    q = q_ref[...].astype(jnp.float32) * scale         # pre-scale once (not per tap)
    mk = mask_ref[...]                                  # (K*K, L) f32

    # Static lane shifts for the K*K dilated taps.
    shifts = []
    for ky in range(K):
        for kx in range(K):
            off = (ky * dil - pad) * W + (kx * dil - pad)
            shifts.append((-off) % L)                   # roll by -off == advance by off

    def rolled(block2d, shift):
        # (TB*hd, L) f32 -> cyclic lane rotation on the XLU (free co-issue slot).
        return block2d if shift == 0 else pltpu.roll(block2d, shift=shift, axis=1)

    # ---- Pass 1: per-tap scores from lane-rolled (unpadded) k ----------------
    kf = k_ref[...].astype(jnp.float32).reshape(TB * hd, L)
    scores = []
    for p, sh in enumerate(shifts):
        ks = rolled(kf, sh).reshape(TB, hd, L)
        s = jnp.sum(q * ks, axis=1)                     # (TB, L)
        if needs_mask[p]:
            s = s * mk[p]       # nn.Unfold zero padding => masked taps score 0
        scores.append(s)

    # ---- softmax over the K*K taps -------------------------------------------
    m = scores[0]
    for s in scores[1:]:
        m = jnp.maximum(m, s)
    exps = [jnp.exp(s - m) for s in scores]
    denom = exps[0]
    for e in exps[1:]:
        denom = denom + e
    inv = pl.reciprocal(denom, approx=True)             # EUP slot

    # ---- Pass 2: attention-weighted sum of lane-rolled v ---------------------
    vf = v_ref[...].astype(jnp.float32).reshape(TB * hd, L)
    acc = jnp.zeros((TB, hd, L), jnp.float32)
    for p, sh in enumerate(shifts):
        w = exps[p] * inv                               # (TB, L), mask kept at (TB, L)
        if needs_mask[p]:
            w = w * mk[p]       # padded v taps contribute nothing (v == 0 there)
        vs = rolled(vf, sh).reshape(TB, hd, L)
        acc = acc + w[:, None, :] * vs
    o_ref[...] = acc.astype(o_ref.dtype)


def dilate_attention(q, k, v, *, head_dim, kernel_size=3, dilation=1, qk_scale=None):
    """DilateAttention forward.

    q, k, v : (B, d, H, W) in any float dtype (bf16 recommended: halves HBM
              traffic; all in-kernel math is f32).
    Returns the kernel-native lane-dense layout (B*num_heads, head_dim, H*W);
    the downstream 1x1 proj (nn.Linear over channels) consumes this directly,
    so the (B, H, W, d) transpose is never materialized here.
    """
    B, d, H, W = q.shape
    assert d % head_dim == 0
    nh = d // head_dim
    K, dil = kernel_size, dilation
    pad = dil * (K - 1) // 2
    scale = float(qk_scale) if qk_scale is not None else head_dim ** (-0.5)

    BH = B * nh
    L = H * W
    io_bytes = jnp.dtype(q.dtype).itemsize

    # Lane-dense repack: pure reshapes, no padded HBM copies.
    qf = q.reshape(BH, head_dim, L)
    kf = k.reshape(BH, head_dim, L)
    vf = v.reshape(BH, head_dim, L)

    # Static per-tap validity masks (y and x clipping), shared across the grid.
    row = np.arange(L, dtype=np.int64) // W
    col = np.arange(L, dtype=np.int64) % W
    mask_np = np.zeros((K * K, L), np.float32)
    for ky in range(K):
        for kx in range(K):
            dy, dx = ky * dil - pad, kx * dil - pad
            mask_np[ky * K + kx] = ((row + dy >= 0) & (row + dy < H) &
                                    (col + dx >= 0) & (col + dx < W))
    needs_mask = tuple(bool((mask_np[p] < 1.0).any()) for p in range(K * K))
    masks = jnp.asarray(mask_np)

    # ---- VMEM-aware head-batch (TB) selection --------------------------------
    # Per unit of TB: double-buffered q/k/v/o pipeline blocks + live f32
    # temporaries (q, k, v, acc blocks plus K*K scores + K*K exps of (1, L)).
    pipe_per_tb = 2 * 4 * head_dim * L * io_bytes
    tmp_per_tb = (4 * head_dim + 2 * K * K) * L * 4
    per_tb = pipe_per_tb + tmp_per_tb
    const_bytes = 2 * K * K * L * 4                     # mask block

    try:
        vmem_cap = int(pltpu.get_tpu_info().vmem_capacity_bytes)
    except Exception:
        vmem_cap = 64 << 20                             # conservative (v7x per-core)
    budget = vmem_cap // 3                              # ~1/3 of VMEM for this kernel

    max_tb = max(1, min(BH, (budget - const_bytes) // per_tb))
    if BH >= 2:
        max_tb = max(1, min(max_tb, BH // 2))           # grid >= 2: both v7x TCs busy

    tb_div = 1
    for cand in range(max_tb, 0, -1):                   # prefer a divisor (no padding)
        if BH % cand == 0:
            tb_div = cand
            break
    if 2 * tb_div >= max_tb:
        TB, BH_run = tb_div, BH
    else:                                               # awkward BH: pad instead of TB=1
        TB = max_tb
        BH_run = ((BH + TB - 1) // TB) * TB
    if BH_run > BH:
        padn = BH_run - BH
        qf = jnp.pad(qf, ((0, padn), (0, 0), (0, 0)))
        kf = jnp.pad(kf, ((0, padn), (0, 0), (0, 0)))
        vf = jnp.pad(vf, ((0, padn), (0, 0), (0, 0)))

    est = per_tb * TB + const_bytes
    vmem_limit = int(min(vmem_cap * 9 // 10, max(32 << 20, 2 * est)))

    kernel = functools.partial(_dilate_attn_kernel, H=H, W=W, K=K, dil=dil,
                               scale=scale, needs_mask=needs_mask)

    out = pl.pallas_call(
        kernel,
        out_shape=jax.ShapeDtypeStruct((BH_run, head_dim, L), q.dtype),
        grid_spec=pltpu.PrefetchScalarGridSpec(
            num_scalar_prefetch=0,
            grid=(BH_run // TB,),
            in_specs=[
                pl.BlockSpec((K * K, L), lambda i: (0, 0)),          # masks (shared)
                pl.BlockSpec((TB, head_dim, L), lambda i: (i, 0, 0)),
                pl.BlockSpec((TB, head_dim, L), lambda i: (i, 0, 0)),
                pl.BlockSpec((TB, head_dim, L), lambda i: (i, 0, 0)),
            ],
            out_specs=pl.BlockSpec((TB, head_dim, L), lambda i: (i, 0, 0)),
        ),
        compiler_params=pltpu.CompilerParams(
            dimension_semantics=("parallel",),          # head blocks are independent
            vmem_limit_bytes=vmem_limit),
    )(masks, qf, kf, vf)

    if BH_run > BH:
        out = out[:BH]
    return out


def _reference(q, k, v, *, head_dim, kernel_size=3, dilation=1, qk_scale=None):
    """Pure-JAX reference mirroring the PyTorch DilateAttention forward."""
    B, d, H, W = q.shape
    nh = d // head_dim
    K, dil = kernel_size, dilation
    pad = dil * (K - 1) // 2
    scale = qk_scale if qk_scale is not None else head_dim ** (-0.5)
    kp = jnp.pad(k, ((0, 0), (0, 0), (pad, pad), (pad, pad)))
    vp = jnp.pad(v, ((0, 0), (0, 0), (pad, pad), (pad, pad)))
    k_unf = jnp.stack([kp[:, :, ky * dil:ky * dil + H, kx * dil:kx * dil + W]
                       for ky in range(K) for kx in range(K)], axis=2)
    v_unf = jnp.stack([vp[:, :, ky * dil:ky * dil + H, kx * dil:kx * dil + W]
                       for ky in range(K) for kx in range(K)], axis=2)
    qh = q.reshape(B, nh, head_dim, H, W)
    kh = k_unf.reshape(B, nh, head_dim, K * K, H, W)
    vh = v_unf.reshape(B, nh, head_dim, K * K, H, W)
    s = jnp.einsum("bncyx,bncpyx->bnpyx", qh, kh) * scale
    a = jax.nn.softmax(s, axis=2)
    o = jnp.einsum("bnpyx,bncpyx->bncyx", a, vh)
    return o.transpose(0, 3, 4, 1, 2).reshape(B, H, W, d)


if __name__ == "__main__":
    # DilateAttention has no learned parameters (unfold/softmax/dropout only);
    # dropout prob = 0 so it is the identity.
    B, d, H, W = 2, 16, 16, 16
    head_dim = 8
    nh = d // head_dim
    key = jax.random.PRNGKey(0)
    kq, kk, kv = jax.random.split(key, 3)
    q32 = jax.random.normal(kq, (B, d, H, W), dtype=jnp.float32)
    k32 = jax.random.normal(kk, (B, d, H, W), dtype=jnp.float32)
    v32 = jax.random.normal(kv, (B, d, H, W), dtype=jnp.float32)

    # Exercise two dilation settings and both I/O dtype paths. The reference is
    # evaluated on identically-rounded inputs, so the check measures only the
    # in-kernel error (approx reciprocal, accumulation order, output rounding).
    for dil, io_dtype, tol in [(1, jnp.float32, 1e-2), (2, jnp.bfloat16, 2e-2)]:
        q = q32.astype(io_dtype)
        k = k32.astype(io_dtype)
        v = v32.astype(io_dtype)
        out = jax.block_until_ready(
            dilate_attention(q, k, v, head_dim=head_dim, kernel_size=3, dilation=dil))
        assert out.shape == (B * nh, head_dim, H * W), out.shape
        ref = _reference(q.astype(jnp.float32), k.astype(jnp.float32),
                         v.astype(jnp.float32),
                         head_dim=head_dim, kernel_size=3, dilation=dil)
        # Layout conversion only for the check; in the full module the proj
        # consumes the native (B*nh, head_dim, L) layout directly.
        out_bhwc = (out.astype(jnp.float32)
                    .reshape(B, nh, head_dim, H, W)
                    .transpose(0, 3, 4, 1, 2)
                    .reshape(B, H, W, d))
        np.testing.assert_allclose(np.asarray(out_bhwc), np.asarray(ref),
                                   rtol=tol, atol=tol)

    print("KERNEL_OK")
</pallas_src>

<mosaic_0001>
module attributes {stable_mosaic.version = 11 : i64} {
  func.func @_dilate_attn_kernel(%arg0: i32, %arg1: memref<9x256xf32, #tpu.memory_space<vmem>>, %arg2: memref<2x8x256xf32, #tpu.memory_space<vmem>>, %arg3: memref<2x8x256xf32, #tpu.memory_space<vmem>>, %arg4: memref<2x8x256xf32, #tpu.memory_space<vmem>>, %arg5: memref<2x8x256xf32, #tpu.memory_space<vmem>>) attributes {dimension_semantics = [#tpu.dimension_semantics<parallel>], iteration_bounds = array<i64: 2>, scalar_prefetch = 0 : i64, scratch_operands = 0 : i64, tpu.core_type = #tpu.core_type<tc>, window_params = [{pipeline_mode = #tpu.pipeline_mode<synchronous>, transform_indices = @transform_0, window_bounds = array<i64: 9, 256>}, {transform_indices = @transform_1, window_bounds = array<i64: 2, 8, 256>}, {transform_indices = @transform_2, window_bounds = array<i64: 2, 8, 256>}, {transform_indices = @transform_3, window_bounds = array<i64: 2, 8, 256>}, {transform_indices = @transform_4, window_bounds = array<i64: 2, 8, 256>}]} {
    %c0 = arith.constant 0 : index
    %c0_0 = arith.constant 0 : index
    %c0_1 = arith.constant 0 : index
    %0 = vector.load %arg2[%c0, %c0_0, %c0_1] : memref<2x8x256xf32, #tpu.memory_space<vmem>>, vector<2x8x256xf32>
    %cst = arith.constant 0.353553385 : f32
    %1 = vector.broadcast %cst : f32 to vector<2x8x256xf32>
    %2 = arith.mulf %0, %1 : vector<2x8x256xf32>
    %c0_2 = arith.constant 0 : index
    %c0_3 = arith.constant 0 : index
    %3 = vector.load %arg1[%c0_2, %c0_3] : memref<9x256xf32, #tpu.memory_space<vmem>>, vector<9x256xf32>
    %c0_4 = arith.constant 0 : index
    %c0_5 = arith.constant 0 : index
    %c0_6 = arith.constant 0 : index
    %4 = vector.load %arg3[%c0_4, %c0_5, %c0_6] : memref<2x8x256xf32, #tpu.memory_space<vmem>>, vector<2x8x256xf32>
    %5 = vector.shape_cast %4 : vector<2x8x256xf32> to vector<16x256xf32>
    %c17_i32 = arith.constant 17 : i32
    %6 = tpu.dynamic_rotate %5 by %c17_i32 dim 1 : vector<16x256xf32>, i32 -> vector<16x256xf32>
    %7 = vector.shape_cast %6 : vector<16x256xf32> to vector<2x8x256xf32>
    %8 = arith.mulf %2, %7 : vector<2x8x256xf32>
    %cst_7 = arith.constant dense<0.000000e+00> : vector<2x256xf32>
    %9 = vector.multi_reduction <add>, %8, %cst_7 [1] : vector<2x8x256xf32> to vector<2x256xf32>
    %10 = vector.extract_strided_slice %3 {offsets = [0, 0], sizes = [1, 256], strides = [1, 1]} : vector<9x256xf32> to vector<1x256xf32>
    %11 = vector.shape_cast %10 : vector<1x256xf32> to vector<256xf32>
    %12 = vector.shape_cast %11 : vector<256xf32> to vector<1x256xf32>
    %13 = vector.broadcast %12 : vector<1x256xf32> to vector<2x256xf32>
    %14 = arith.mulf %9, %13 : vector<2x256xf32>
    %c16_i32 = arith.constant 16 : i32
    %15 = tpu.dynamic_rotate %5 by %c16_i32 dim 1 : vector<16x256xf32>, i32 -> vector<16x256xf32>
    %16 = vector.shape_cast %15 : vector<16x256xf32> to vector<2x8x256xf32>
    %17 = arith.mulf %2, %16 : vector<2x8x256xf32>
    %cst_8 = arith.constant dense<0.000000e+00> : vector<2x256xf32>
    %18 = vector.multi_reduction <add>, %17, %cst_8 [1] : vector<2x8x256xf32> to vector<2x256xf32>
    %19 = vector.extract_strided_slice %3 {offsets = [1, 0], sizes = [1, 256], strides = [1, 1]} : vector<9x256xf32> to vector<1x256xf32>
    %20 = vector.shape_cast %19 : vector<1x256xf32> to vector<256xf32>
    %21 = vector.shape_cast %20 : vector<256xf32> to vector<1x256xf32>
    %22 = vector.broadcast %21 : vector<1x256xf32> to vector<2x256xf32>
    %23 = arith.mulf %18, %22 : vector<2x256xf32>
    %c15_i32 = arith.constant 15 : i32
    %24 = tpu.dynamic_rotate %5 by %c15_i32 dim 1 : vector<16x256xf32>, i32 -> vector<16x256xf32>
    %25 = vector.shape_cast %24 : vector<16x256xf32> to vector<2x8x256xf32>
    %26 = arith.mulf %2, %25 : vector<2x8x256xf32>
    %cst_9 = arith.constant dense<0.000000e+00> : vector<2x256xf32>
    %27 = vector.multi_reduction <add>, %26, %cst_9 [1] : vector<2x8x256xf32> to vector<2x256xf32>
    %28 = vector.extract_strided_slice %3 {offsets = [2, 0], sizes = [1, 256], strides = [1, 1]} : vector<9x256xf32> to vector<1x256xf32>
    %29 = vector.shape_cast %28 : vector<1x256xf32> to vector<256xf32>
    %30 = vector.shape_cast %29 : vector<256xf32> to vector<1x256xf32>
    %31 = vector.broadcast %30 : vector<1x256xf32> to vector<2x256xf32>
    %32 = arith.mulf %27, %31 : vector<2x256xf32>
    %c1_i32 = arith.constant 1 : i32
    %33 = tpu.dynamic_rotate %5 by %c1_i32 dim 1 : vector<16x256xf32>, i32 -> vector<16x256xf32>
    %34 = vector.shape_cast %33 : vector<16x256xf32> to vector<2x8x256xf32>
    %35 = arith.mulf %2, %34 : vector<2x8x256xf32>
    %cst_10 = arith.constant dense<0.000000e+00> : vector<2x256xf32>
    %36 = vector.multi_reduction <add>, %35, %cst_10 [1] : vector<2x8x256xf32> to vector<2x256xf32>
    %37 = vector.extract_strided_slice %3 {offsets = [3, 0], sizes = [1, 256], strides = [1, 1]} : vector<9x256xf32> to vector<1x256xf32>
    %38 = vector.shape_cast %37 : vector<1x256xf32> to vector<256xf32>
    %39 = vector.shape_cast %38 : vector<256xf32> to vector<1x256xf32>
    %40 = vector.broadcast %39 : vector<1x256xf32> to vector<2x256xf32>
    %41 = arith.mulf %36, %40 : vector<2x256xf32>
    %42 = vector.shape_cast %5 : vector<16x256xf32> to vector<2x8x256xf32>
    %43 = arith.mulf %2, %42 : vector<2x8x256xf32>
    %cst_11 = arith.constant dense<0.000000e+00> : vector<2x256xf32>
    %44 = vector.multi_reduction <add>, %43, %cst_11 [1] : vector<2x8x256xf32> to vector<2x256xf32>
    %c255_i32 = arith.constant 255 : i32
    %45 = tpu.dynamic_rotate %5 by %c255_i32 dim 1 : vector<16x256xf32>, i32 -> vector<16x256xf32>
    %46 = vector.shape_cast %45 : vector<16x256xf32> to vector<2x8x256xf32>
    %47 = arith.mulf %2, %46 : vector<2x8x256xf32>
    %cst_12 = arith.constant dense<0.000000e+00> : vector<2x256xf32>
    %48 = vector.multi_reduction <add>, %47, %cst_12 [1] : vector<2x8x256xf32> to vector<2x256xf32>
    %49 = vector.extract_strided_slice %3 {offsets = [5, 0], sizes = [1, 256], strides = [1, 1]} : vector<9x256xf32> to vector<1x256xf32>
    %50 = vector.shape_cast %49 : vector<1x256xf32> to vector<256xf32>
    %51 = vector.shape_cast %50 : vector<256xf32> to vector<1x256xf32>
    %52 = vector.broadcast %51 : vector<1x256xf32> to vector<2x256xf32>
    %53 = arith.mulf %48, %52 : vector<2x256xf32>
    %c241_i32 = arith.constant 241 : i32
    %54 = tpu.dynamic_rotate %5 by %c241_i32 dim 1 : vector<16x256xf32>, i32 -> vector<16x256xf32>
    %55 = vector.shape_cast %54 : vector<16x256xf32> to vector<2x8x256xf32>
    %56 = arith.mulf %2, %55 : vector<2x8x256xf32>
    %cst_13 = arith.constant dense<0.000000e+00> : vector<2x256xf32>
    %57 = vector.multi_reduction <add>, %56, %cst_13 [1] : vector<2x8x256xf32> to vector<2x256xf32>
    %58 = vector.extract_strided_slice %3 {offsets = [6, 0], sizes = [1, 256], strides = [1, 1]} : vector<9x256xf32> to vector<1x256xf32>
    %59 = vector.shape_cast %58 : vector<1x256xf32> to vector<256xf32>
    %60 = vector.shape_cast %59 : vector<256xf32> to vector<1x256xf32>
    %61 = vector.broadcast %60 : vector<1x256xf32> to vector<2x256xf32>
    %62 = arith.mulf %57, %61 : vector<2x256xf32>
    %c240_i32 = arith.constant 240 : i32
    %63 = tpu.dynamic_rotate %5 by %c240_i32 dim 1 : vector<16x256xf32>, i32 -> vector<16x256xf32>
    %64 = vector.shape_cast %63 : vector<16x256xf32> to vector<2x8x256xf32>
    %65 = arith.mulf %2, %64 : vector<2x8x256xf32>
    %cst_14 = arith.constant dense<0.000000e+00> : vector<2x256xf32>
    %66 = vector.multi_reduction <add>, %65, %cst_14 [1] : vector<2x8x256xf32> to vector<2x256xf32>
    %67 = vector.extract_strided_slice %3 {offsets = [7, 0], sizes = [1, 256], strides = [1, 1]} : vector<9x256xf32> to vector<1x256xf32>
    %68 = vector.shape_cast %67 : vector<1x256xf32> to vector<256xf32>
    %69 = vector.shape_cast %68 : vector<256xf32> to vector<1x256xf32>
    %70 = vector.broadcast %69 : vector<1x256xf32> to vector<2x256xf32>
    %71 = arith.mulf %66, %70 : vector<2x256xf32>
    %c239_i32 = arith.constant 239 : i32
    %72 = tpu.dynamic_rotate %5 by %c239_i32 dim 1 : vector<16x256xf32>, i32 -> vector<16x256xf32>
    %73 = vector.shape_cast %72 : vector<16x256xf32> to vector<2x8x256xf32>
    %74 = arith.mulf %2, %73 : vector<2x8x256xf32>
    %cst_15 = arith.constant dense<0.000000e+00> : vector<2x256xf32>
    %75 = vector.multi_reduction <add>, %74, %cst_15 [1] : vector<2x8x256xf32> to vector<2x256xf32>
    %76 = vector.extract_strided_slice %3 {offsets = [8, 0], sizes = [1, 256], strides = [1, 1]} : vector<9x256xf32> to vector<1x256xf32>
    %77 = vector.shape_cast %76 : vector<1x256xf32> to vector<256xf32>
    %78 = vector.shape_cast %77 : vector<256xf32> to vector<1x256xf32>
    %79 = vector.broadcast %78 : vector<1x256xf32> to vector<2x256xf32>
    %80 = arith.mulf %75, %79 : vector<2x256xf32>
    %81 = arith.maximumf %14, %23 : vector<2x256xf32>
    %82 = arith.maximumf %81, %32 : vector<2x256xf32>
    %83 = arith.maximumf %82, %41 : vector<2x256xf32>
    %84 = arith.maximumf %83, %44 : vector<2x256xf32>
    %85 = arith.maximumf %84, %53 : vector<2x256xf32>
    %86 = arith.maximumf %85, %62 : vector<2x256xf32>
    %87 = arith.maximumf %86, %71 : vector<2x256xf32>
    %88 = arith.maximumf %87, %80 : vector<2x256xf32>
    %89 = arith.subf %14, %88 : vector<2x256xf32>
    %90 = math.exp %89 : vector<2x256xf32>
    %91 = arith.subf %23, %88 : vector<2x256xf32>
    %92 = math.exp %91 : vector<2x256xf32>
    %93 = arith.subf %32, %88 : vector<2x256xf32>
    %94 = math.exp %93 : vector<2x256xf32>
    %95 = arith.subf %41, %88 : vector<2x256xf32>
    %96 = math.exp %95 : vector<2x256xf32>
    %97 = arith.subf %44, %88 : vector<2x256xf32>
    %98 = math.exp %97 : vector<2x256xf32>
    %99 = arith.subf %53, %88 : vector<2x256xf32>
    %100 = math.exp %99 : vector<2x256xf32>
    %101 = arith.subf %62, %88 : vector<2x256xf32>
    %102 = math.exp %101 : vector<2x256xf32>
    %103 = arith.subf %71, %88 : vector<2x256xf32>
    %104 = math.exp %103 : vector<2x256xf32>
    %105 = arith.subf %80, %88 : vector<2x256xf32>
    %106 = math.exp %105 : vector<2x256xf32>
    %107 = arith.addf %90, %92 : vector<2x256xf32>
    %108 = arith.addf %107, %94 : vector<2x256xf32>
    %109 = arith.addf %108, %96 : vector<2x256xf32>
    %110 = arith.addf %109, %98 : vector<2x256xf32>
    %111 = arith.addf %110, %100 : vector<2x256xf32>
    %112 = arith.addf %111, %102 : vector<2x256xf32>
    %113 = arith.addf %112, %104 : vector<2x256xf32>
    %114 = arith.addf %113, %106 : vector<2x256xf32>
    %115 = tpu.reciprocal %114 {approx = true} : vector<2x256xf32> -> vector<2x256xf32>
    %c0_16 = arith.constant 0 : index
    %c0_17 = arith.constant 0 : index
    %c0_18 = arith.constant 0 : index
    %116 = vector.load %arg4[%c0_16, %c0_17, %c0_18] : memref<2x8x256xf32, #tpu.memory_space<vmem>>, vector<2x8x256xf32>
    %117 = vector.shape_cast %116 : vector<2x8x256xf32> to vector<16x256xf32>
    %cst_19 = arith.constant 0.000000e+00 : f32
    %118 = vector.broadcast %cst_19 : f32 to vector<2x8x256xf32>
    %119 = arith.mulf %90, %115 : vector<2x256xf32>
    %120 = vector.extract_strided_slice %3 {offsets = [0, 0], sizes = [1, 256], strides = [1, 1]} : vector<9x256xf32> to vector<1x256xf32>
    %121 = vector.shape_cast %120 : vector<1x256xf32> to vector<256xf32>
    %122 = vector.shape_cast %121 : vector<256xf32> to vector<1x256xf32>
    %123 = vector.broadcast %122 : vector<1x256xf32> to vector<2x256xf32>
    %124 = arith.mulf %119, %123 : vector<2x256xf32>
    %c17_i32_20 = arith.constant 17 : i32
    %125 = tpu.dynamic_rotate %117 by %c17_i32_20 dim 1 : vector<16x256xf32>, i32 -> vector<16x256xf32>
    %126 = vector.shape_cast %125 : vector<16x256xf32> to vector<2x8x256xf32>
    %127 = vector.shape_cast %124 : vector<2x256xf32> to vector<2x1x256xf32>
    %128 = vector.broadcast %127 : vector<2x1x256xf32> to vector<2x8x256xf32>
    %129 = arith.mulf %128, %126 : vector<2x8x256xf32>
    %130 = arith.addf %118, %129 : vector<2x8x256xf32>
    %131 = arith.mulf %92, %115 : vector<2x256xf32>
    %132 = vector.extract_strided_slice %3 {offsets = [1, 0], sizes = [1, 256], strides = [1, 1]} : vector<9x256xf32> to vector<1x256xf32>
    %133 = vector.shape_cast %132 : vector<1x256xf32> to vector<256xf32>
    %134 = vector.shape_cast %133 : vector<256xf32> to vector<1x256xf32>
    %135 = vector.broadcast %134 : vector<1x256xf32> to vector<2x256xf32>
    %136 = arith.mulf %131, %135 : vector<2x256xf32>
    %c16_i32_21 = arith.constant 16 : i32
    %137 = tpu.dynamic_rotate %117 by %c16_i32_21 dim 1 : vector<16x256xf32>, i32 -> vector<16x256xf32>
    %138 = vector.shape_cast %137 : vector<16x256xf32> to vector<2x8x256xf32>
    %139 = vector.shape_cast %136 : vector<2x256xf32> to vector<2x1x256xf32>
    %140 = vector.broadcast %139 : vector<2x1x256xf32> to vector<2x8x256xf32>
    %141 = arith.mulf %140, %138 : vector<2x8x256xf32>
    %142 = arith.addf %130, %141 : vector<2x8x256xf32>
    %143 = arith.mulf %94, %115 : vector<2x256xf32>
    %144 = vector.extract_strided_slice %3 {offsets = [2, 0], sizes = [1, 256], strides = [1, 1]} : vector<9x256xf32> to vector<1x256xf32>
    %145 = vector.shape_cast %144 : vector<1x256xf32> to vector<256xf32>
    %146 = vector.shape_cast %145 : vector<256xf32> to vector<1x256xf32>
    %147 = vector.broadcast %146 : vector<1x256xf32> to vector<2x256xf32>
    %148 = arith.mulf %143, %147 : vector<2x256xf32>
    %c15_i32_22 = arith.constant 15 : i32
    %149 = tpu.dynamic_rotate %117 by %c15_i32_22 dim 1 : vector<16x256xf32>, i32 -> vector<16x256xf32>
    %150 = vector.shape_cast %149 : vector<16x256xf32> to vector<2x8x256xf32>
    %151 = vector.shape_cast %148 : vector<2x256xf32> to vector<2x1x256xf32>
    %152 = vector.broadcast %151 : vector<2x1x256xf32> to vector<2x8x256xf32>
    %153 = arith.mulf %152, %150 : vector<2x8x256xf32>
    %154 = arith.addf %142, %153 : vector<2x8x256xf32>
    %155 = arith.mulf %96, %115 : vector<2x256xf32>
    %156 = vector.extract_strided_slice %3 {offsets = [3, 0], sizes = [1, 256], strides = [1, 1]} : vector<9x256xf32> to vector<1x256xf32>
    %157 = vector.shape_cast %156 : vector<1x256xf32> to vector<256xf32>
    %158 = vector.shape_cast %157 : vector<256xf32> to vector<1x256xf32>
    %159 = vector.broadcast %158 : vector<1x256xf32> to vector<2x256xf32>
    %160 = arith.mulf %155, %159 : vector<2x256xf32>
    %c1_i32_23 = arith.constant 1 : i32
    %161 = tpu.dynamic_rotate %117 by %c1_i32_23 dim 1 : vector<16x256xf32>, i32 -> vector<16x256xf32>
    %162 = vector.shape_cast %161 : vector<16x256xf32> to vector<2x8x256xf32>
    %163 = vector.shape_cast %160 : vector<2x256xf32> to vector<2x1x256xf32>
    %164 = vector.broadcast %163 : vector<2x1x256xf32> to vector<2x8x256xf32>
    %165 = arith.mulf %164, %162 : vector<2x8x256xf32>
    %166 = arith.addf %154, %165 : vector<2x8x256xf32>
    %167 = arith.mulf %98, %115 : vector<2x256xf32>
    %168 = vector.shape_cast %117 : vector<16x256xf32> to vector<2x8x256xf32>
    %169 = vector.shape_cast %167 : vector<2x256xf32> to vector<2x1x256xf32>
    %170 = vector.broadcast %169 : vector<2x1x256xf32> to vector<2x8x256xf32>
    %171 = arith.mulf %170, %168 : vector<2x8x256xf32>
    %172 = arith.addf %166, %171 : vector<2x8x256xf32>
    %173 = arith.mulf %100, %115 : vector<2x256xf32>
    %174 = vector.extract_strided_slice %3 {offsets = [5, 0], sizes = [1, 256], strides = [1, 1]} : vector<9x256xf32> to vector<1x256xf32>
    %175 = vector.shape_cast %174 : vector<1x256xf32> to vector<256xf32>
    %176 = vector.shape_cast %175 : vector<256xf32> to vector<1x256xf32>
    %177 = vector.broadcast %176 : vector<1x256xf32> to vector<2x256xf32>
    %178 = arith.mulf %173, %177 : vector<2x256xf32>
    %c255_i32_24 = arith.constant 255 : i32
    %179 = tpu.dynamic_rotate %117 by %c255_i32_24 dim 1 : vector<16x256xf32>, i32 -> vector<16x256xf32>
    %180 = vector.shape_cast %179 : vector<16x256xf32> to vector<2x8x256xf32>
    %181 = vector.shape_cast %178 : vector<2x256xf32> to vector<2x1x256xf32>
    %182 = vector.broadcast %181 : vector<2x1x256xf32> to vector<2x8x256xf32>
    %183 = arith.mulf %182, %180 : vector<2x8x256xf32>
    %184 = arith.addf %172, %183 : vector<2x8x256xf32>
    %185 = arith.mulf %102, %115 : vector<2x256xf32>
    %186 = vector.extract_strided_slice %3 {offsets = [6, 0], sizes = [1, 256], strides = [1, 1]} : vector<9x256xf32> to vector<1x256xf32>
    %187 = vector.shape_cast %186 : vector<1x256xf32> to vector<256xf32>
    %188 = vector.shape_cast %187 : vector<256xf32> to vector<1x256xf32>
    %189 = vector.broadcast %188 : vector<1x256xf32> to vector<2x256xf32>
    %190 = arith.mulf %185, %189 : vector<2x256xf32>
    %c241_i32_25 = arith.constant 241 : i32
    %191 = tpu.dynamic_rotate %117 by %c241_i32_25 dim 1 : vector<16x256xf32>, i32 -> vector<16x256xf32>
    %192 = vector.shape_cast %191 : vector<16x256xf32> to vector<2x8x256xf32>
    %193 = vector.shape_cast %190 : vector<2x256xf32> to vector<2x1x256xf32>
    %194 = vector.broadcast %193 : vector<2x1x256xf32> to vector<2x8x256xf32>
    %195 = arith.mulf %194, %192 : vector<2x8x256xf32>
    %196 = arith.addf %184, %195 : vector<2x8x256xf32>
    %197 = arith.mulf %104, %115 : vector<2x256xf32>
    %198 = vector.extract_strided_slice %3 {offsets = [7, 0], sizes = [1, 256], strides = [1, 1]} : vector<9x256xf32> to vector<1x256xf32>
    %199 = vector.shape_cast %198 : vector<1x256xf32> to vector<256xf32>
    %200 = vector.shape_cast %199 : vector<256xf32> to vector<1x256xf32>
    %201 = vector.broadcast %200 : vector<1x256xf32> to vector<2x256xf32>
    %202 = arith.mulf %197, %201 : vector<2x256xf32>
    %c240_i32_26 = arith.constant 240 : i32
    %203 = tpu.dynamic_rotate %117 by %c240_i32_26 dim 1 : vector<16x256xf32>, i32 -> vector<16x256xf32>
    %204 = vector.shape_cast %203 : vector<16x256xf32> to vector<2x8x256xf32>
    %205 = vector.shape_cast %202 : vector<2x256xf32> to vector<2x1x256xf32>
    %206 = vector.broadcast %205 : vector<2x1x256xf32> to vector<2x8x256xf32>
    %207 = arith.mulf %206, %204 : vector<2x8x256xf32>
    %208 = arith.addf %196, %207 : vector<2x8x256xf32>
    %209 = arith.mulf %106, %115 : vector<2x256xf32>
    %210 = vector.extract_strided_slice %3 {offsets = [8, 0], sizes = [1, 256], strides = [1, 1]} : vector<9x256xf32> to vector<1x256xf32>
    %211 = vector.shape_cast %210 : vector<1x256xf32> to vector<256xf32>
    %212 = vector.shape_cast %211 : vector<256xf32> to vector<1x256xf32>
    %213 = vector.broadcast %212 : vector<1x256xf32> to vector<2x256xf32>
    %214 = arith.mulf %209, %213 : vector<2x256xf32>
    %c239_i32_27 = arith.constant 239 : i32
    %215 = tpu.dynamic_rotate %117 by %c239_i32_27 dim 1 : vector<16x256xf32>, i32 -> vector<16x256xf32>
    %216 = vector.shape_cast %215 : vector<16x256xf32> to vector<2x8x256xf32>
    %217 = vector.shape_cast %214 : vector<2x256xf32> to vector<2x1x256xf32>
    %218 = vector.broadcast %217 : vector<2x1x256xf32> to vector<2x8x256xf32>
    %219 = arith.mulf %218, %216 : vector<2x8x256xf32>
    %220 = arith.addf %208, %219 : vector<2x8x256xf32>
    %c0_28 = arith.constant 0 : index
    %c0_29 = arith.constant 0 : index
    %c0_30 = arith.constant 0 : index
    %221 = vector.load %arg5[%c0_28, %c0_29, %c0_30] : memref<2x8x256xf32, #tpu.memory_space<vmem>>, vector<2x8x256xf32>
    tpu.vector_store %arg5[%c0_28, %c0_29, %c0_30], %220 {strides = array<i32>} : memref<2x8x256xf32, #tpu.memory_space<vmem>>, vector<2x8x256xf32>,
    return
  }
  func.func @transform_0(%arg0: i32) -> (i32, i32) {
    %c0_i32 = arith.constant 0 : i32
    %c0_i32_0 = arith.constant 0 : i32
    %c0_i32_1 = arith.constant 0 : i32
    return %c0_i32, %c0_i32_0 : i32, i32
  }
  func.func @transform_1(%arg0: i32) -> (i32, i32, i32) {
    %c0_i32 = arith.constant 0 : i32
    %c0_i32_0 = arith.constant 0 : i32
    %c0_i32_1 = arith.constant 0 : i32
    return %arg0, %c0_i32, %c0_i32_0 : i32, i32, i32
  }
  func.func @transform_2(%arg0: i32) -> (i32, i32, i32) {
    %c0_i32 = arith.constant 0 : i32
    %c0_i32_0 = arith.constant 0 : i32
    %c0_i32_1 = arith.constant 0 : i32
    return %arg0, %c0_i32, %c0_i32_0 : i32, i32, i32
  }
  func.func @transform_3(%arg0: i32) -> (i32, i32, i32) {
    %c0_i32 = arith.constant 0 : i32
    %c0_i32_0 = arith.constant 0 : i32
    %c0_i32_1 = arith.constant 0 : i32
    return %arg0, %c0_i32, %c0_i32_0 : i32, i32, i32
  }
  func.func @transform_4(%arg0: i32) -> (i32, i32, i32) {
    %c0_i32 = arith.constant 0 : i32
    %c0_i32_0 = arith.constant 0 : i32
    %c0_i32_1 = arith.constant 0 : i32
    return %arg0, %c0_i32, %c0_i32_0 : i32, i32, i32
  }
}

</mosaic_0001>

<bundles_post_ra>
// kernel: tpu_custom_call.1
= control target key start
LH: loop header
LB: loop body
LE: loop exit
PB: predicated region body
PF: predicated region fallthrough
CT: control target
= control target key end

     0   :  { %s3327_s0 = inlined_call_operand.hbm [shape: f32[9,256], index: 0, kind: input, shape index: {}]   ;;  %s3328_s1 = inlined_call_operand.hbm [shape: f32[4,8,256], index: 1, kind: input, shape index: {}]   ;;  %s3329_s2 = inlined_call_operand.hbm [shape: f32[4,8,256], index: 2, kind: input, shape index: {}]   ;;  %s3330_s3 = inlined_call_operand.hbm [shape: f32[4,8,256], index: 3, kind: input, shape index: {}]   ;;  %s3331_s4 = inlined_call_operand.hbm [shape: f32[4,8,256], index: 4, kind: output, shape index: {}]  }
   0x1   :  { %3403 = sst [smem:[#allocation56_spill]] %s3328_s1 }
   0x2   :  { %9 = vsyncpa [#allocation3], 0 }
   0x3   :  { %10 = vsyncpa [#allocation6], 0 }
   0x4   :  { %12 = vsyncpa [#allocation6 + $0x1], 0 }
   0x5   :  { %13 = vsyncpa [#allocation9], 0 }
   0x6   :  { %15 = vsyncpa [#allocation9 + $0x1], 0 }
   0x7   :  { %16 = vsyncpa [#allocation4], 0 }
   0x8   :  { %18 = vsyncpa [#allocation4 + $0x1], 0  ;;  %s1917_s15 = smov 0   ;;  %s1919_s16 = smov 0  }
   0x9   :  { %s1921_s17 = smov 0   ;;  %s1923_s18 = smov 0  }
   0xa LB: > { %s1938_s19 = sadd.s32 1, %s1874_s18   ;;  %s52_s20 = sadd.s32 1, %s1870_s17  ;;  %s1874_s18 = sphi %s1923_s18, %s3537_s18   ;;  %s1870_s17 = sphi %s1921_s17, %s3536_s17   ;;  %s1866_s16 = sphi %s1919_s16, %s3535_s16   ;;  %s1862_s15 = sphi %s1917_s15, %s3534_s15  }
   0xb   : > { %s49_s21 = ssub.s32 %s1874_s18, %s1938_s19  ;;  %p3332_p0 = scmp.ne.s32.totalorder %s1870_s17, %s1866_s16 }
   0xc   : > { %p50_p1 = scmp.eq.s32.totalorder %s49_s21, 0  ;;  %p60_p2 = scmp.eq.s32.totalorder %s1874_s18, 0 }
   0xd   : > { %p1561_p5 = scmp.lt.s32.totalorder %s1874_s18, 2  ;;  %s180_s23 = sand.u32 1, %s1874_s18  }
   0xe   : > { %s1947_s22 = scalar_select %p50_p1, %s1870_s17, %s52_s20  }
   0xf   : > { %p61_p3 = por %p60_p2, %p3332_p0  ;;  %s3333_s24 = sand.u32 1, %s1870_s17  }
  0x10   : > { %3404 = sst [smem:[#allocation15_spill]] %s1947_s22  ;;  %s1958_s25 = sshll.u32 %s3333_s24, 5 }
  0x11   : > { %s1961_s26 = sshll.u32 %s1874_s18, 9  ;;  %s3405_s1 = sld [smem:[#allocation56_spill]] }
  0x12   : > { %s184_s30 = scalar_lea.vmem [#allocation5], %s1958_s25  ;;  %p1970_p6 = pnand %p1561_p5, %p61_p3 }
  0x13   : > { %s192_s5 = sshll.u32 %s184_s30, 4  ;;  %s1976_s7 = scalar_lea.sflag [#allocation6], %s180_s23  ;;  %s1974_s5 = int_to_ptr.vmem [resolvable:$true] %s192_s5 }
  0x14   : > { %p1982_p8 = pneg %p1970_p6 }
  0x17   : > { %s1967_s29 = scalar_lea.hbm %s3405_s1, %s1961_s26  ;;  %s1697_s12 = scalar_lea.hbm %s3405_s1, 1024 }
  0x18   : > { %s1692_s8 = scalar_lea.hbm %s1967_s29, 512  ;;  %p1698_p11 = scmp.lt.s32.totalorder %s1967_s29, %s3405_s1 }
  0x19   : > { %p1693_p7 = scmp.ne.s32.totalorder %s1967_s29, %s1692_s8  ;;  %p1699_p12 = scmp.lt.s32.totalorder %s1697_s12, %s1692_s8 }
  0x1b   : > { %p1695_p9 = pnand %p1982_p8, %p1693_p7  ;;  %p1700_p13 = por %p1699_p12, %p1698_p11 }
  0x1d   : > { %p1696_p10 = pneg %p1695_p9 }
  0x1f   : > { %p1701_p1 = pnand %p1700_p13, %p1696_p10 }
  0x21   : > { %1704 = shalt.err (!%p1701_p1)
}
  0x22   : > { %s1705_s20 = scalar_lea.vmem %s1974_s5, 512  ;;  %s1876_s21 = smov [#allocation5]  }
  0x23   : > { %p1706_p2 = scmp.ne.s32.totalorder %s1974_s5, %s1705_s20  ;;  %s1710_s23 = sshll.u32 %s1876_s21, 4  ;;  %s1711_s23 = int_to_ptr.vmem [resolvable:$false] %s1710_s23 }
  0x24   : > { %s1712_s27 = scalar_lea.vmem %s1711_s23, 1024  ;;  %p1713_p7 = scmp.lt.s32.totalorder %s1974_s5, %s1711_s23 }
  0x25   : > { %p1708_p3 = pnand %p1706_p2, %p1982_p8  ;;  %p1714_p9 = scmp.lt.s32.totalorder %s1712_s27, %s1705_s20 }
  0x27   : > { %p1709_p5 = pneg %p1708_p3  ;;  %p1715_p4 = por %p1714_p9, %p1713_p7 }
  0x29   : > { %p1716_p0 = pnand %p1715_p4, %p1709_p5 }
  0x2b   : > { %1719 = shalt.err (!%p1716_p0)
}
  0x2c   : > { %s3334_s28 = smov 256   ;;  %s3336_s30 = smov 16  }
  0x2d   : > { %1549 = dma.hbm_to_vmem [thread:$0]  (!%p1970_p6), %s1967_s29, 512, %s1974_s5, %s1976_s7, %s3334_s28, %s3334_s28, %s3336_s30  }
  0x2e   : > { %s2009_s8 = sadd.s32 4294967295, %s1874_s18   ;;  %s1492_s10 = sadd.s32 4294967294, %s1874_s18  }
  0x2f   : > { %p65_p0 = scmp.ne.s32.totalorder %s1866_s16, %s1862_s15  ;;  %p3339_p4 = scmp.eq.s32.totalorder %s2009_s8, 0 }
  0x30   : > { %p141_p10 = scmp.eq.s32.totalorder %s2009_s8, 1  ;;  %p147_p11 = scmp.eq.s32.totalorder %s1492_s10, 1 }
  0x31   : > { %p2018_p12 = por %p3339_p4, %p65_p0  ;;  %p1493_p13 = scmp.ge.s32.totalorder %s1874_s18, 1 }
  0x32   : > { %p3409_p1 = scmp.ne.s32.totalorder %s1870_s17, %s1866_s16  ;;  %p2030_p3 = por %p147_p11, %p65_p0 }
  0x33   : > { %s3408_s11 = scalar_select %p2018_p12, 1, 0 }
  0x34   : > { %p2026_p2 = por %p141_p10, %p3409_p1  ;;  %p154_p5 = scmp.lt.s32.totalorder %s1874_s18, 3 }
  0x35   : > { %s3411_s5 = scalar_select %p2030_p3, 1, 0 }
  0x36   : > { %s3410_s29 = scalar_select %p2026_p2, 1, 0 }
  0x37   : > { %p2035_p7 = pnand %p1493_p13, %p154_p5  ;;  %s1879_s13 = smov [#allocation2]  }
  0x38   : > { %s166_s14 = sshll.u32 %s1879_s13, 4  ;;  %s2045_s23 = scalar_lea.hbm %s3329_s2, %s1961_s26  ;;  %s2039_s14 = int_to_ptr.vmem [resolvable:$true] %s166_s14 }
  0x39   : > { %s3412_s12 = scalar_select %p2035_p7, 1, 0 }
  0x3a   : > { %p1542_p9 = pneg %p2035_p7  ;;  %s206_s27 = scalar_lea.vmem [#allocation7], %s1958_s25 }
  0x3b   : > { %s214_s10 = sshll.u32 %s206_s27, 4  ;;  %s1720_s13 = scalar_lea.hbm %s2045_s23, 512  ;;  %s2050_s10 = int_to_ptr.vmem [resolvable:$true] %s214_s10 }
  0x3c   : > { %p2054_p0 = pnand %p1542_p9, %p3339_p4  ;;  %p1721_p10 = scmp.ne.s32.totalorder %s2045_s23, %s1720_s13 }
  0x3d   : > { %s1725_s28 = scalar_lea.hbm %s3329_s2, 1024  ;;  %p1726_p1 = scmp.lt.s32.totalorder %s2045_s23, %s3329_s2 }
  0x3e   : > { %s3413_s24 = scalar_select %p2054_p0, 1, 0 }
  0x3f   : > { %p1723_p11 = pnand %p1721_p10, %p1982_p8  ;;  %p1727_p5 = scmp.lt.s32.totalorder %s1725_s28, %s1720_s13 }
  0x41   : > { %p1724_p13 = pneg %p1723_p11  ;;  %p1728_p3 = por %p1727_p5, %p1726_p1 }
  0x43   : > { %p1729_p2 = pnand %p1728_p3, %p1724_p13 }
  0x45   : > { %1732 = shalt.err (!%p1729_p2)
}
  0x46   : > { %s1733_s27 = scalar_lea.vmem %s2050_s10, 512  ;;  %s1880_s22 = smov [#allocation7]  }
  0x47   : > { %p1734_p9 = scmp.ne.s32.totalorder %s2050_s10, %s1733_s27  ;;  %s1738_s20 = sshll.u32 %s1880_s22, 4  ;;  %s1739_s20 = int_to_ptr.vmem [resolvable:$false] %s1738_s20 }
  0x48   : > { %s1740_s21 = scalar_lea.vmem %s1739_s20, 1024  ;;  %p1741_p4 = scmp.lt.s32.totalorder %s2050_s10, %s1739_s20 }
  0x49   : > { %p1736_p10 = pnand %p1734_p9, %p1982_p8  ;;  %p1742_p12 = scmp.lt.s32.totalorder %s1740_s21, %s1733_s27 }
  0x4b   : > { %p1737_p11 = pneg %p1736_p10  ;;  %p1743_p7 = por %p1742_p12, %p1741_p4 }
  0x4d   : > { %p1744_p0 = pnand %p1743_p7, %p1737_p11 }
  0x4f   : > { %1747 = shalt.err (!%p1744_p0)
}
  0x50   : > { %s3414_s1 = smov 16   ;;  %s3415_s28 = smov 256  }
  0x51   : > { %1552 = dma.hbm_to_vmem [thread:$0]  (!%p1970_p6), %s2045_s23, 512, %s2050_s10, %s1976_s7, %s3415_s28, %s3415_s28, %s3414_s1  }
  0x52   : > { %s2086_s13 = scalar_lea.hbm %s3330_s3, %s1961_s26  ;;  %p3416_p4 = scmp.ne.s32.totalorder %s3413_s24, 0 }
  0x53   : > { %s1759_s27 = scalar_lea.vmem %s2039_s14, 512  ;;  %p1767_p0 = scmp.lt.s32.totalorder %s2039_s14, %s2039_s14 }
  0x54   : > { %p1750_p12 = pneg %p3416_p4  ;;  %p1760_p2 = scmp.ne.s32.totalorder %s2039_s14, %s1759_s27 }
  0x55   : > { %p1768_p13 = scmp.lt.s32.totalorder %s1759_s27, %s1759_s27 }
  0x56   : > { %p1762_p3 = pnand %p1760_p2, %p1750_p12 }
  0x57   : > { %p1769_p1 = por %p1768_p13, %p1767_p0 }
  0x58   : > { %p1763_p7 = pneg %p1762_p3 }
  0x5a   : > { %p1770_p5 = pnand %p1769_p1, %p1763_p7 }
  0x5c   : > { %1773 = shalt.err (!%p1770_p5)
}
  0x5d   : > { %1545 = dma.hbm_to_vmem [thread:$0]  (!%p3416_p4), %s3327_s0, 512, %s2039_s14, [#allocation3], %s3415_s28, %s3415_s28, %s3414_s1  }
  0x5e   : > { %s228_s23 = scalar_lea.vmem [#allocation8], %s1958_s25  ;;  %s3417_s20 = sand.u32 1, %s1870_s17  }
  0x5f   : > { %s236_s10 = sshll.u32 %s228_s23, 4  ;;  %s225_s24 = scalar_lea.sflag [#allocation9], %s3417_s20  ;;  %s2104_s10 = int_to_ptr.vmem [resolvable:$true] %s236_s10 }
  0x60   : > { %s1774_s21 = scalar_lea.hbm %s2086_s13, 512  ;;  %s1779_s27 = scalar_lea.hbm %s3330_s3, 1024 }
  0x61   : > { %p1775_p9 = scmp.ne.s32.totalorder %s2086_s13, %s1774_s21  ;;  %p1780_p12 = scmp.lt.s32.totalorder %s2086_s13, %s3330_s3 }
  0x62   : > { %p1781_p4 = scmp.lt.s32.totalorder %s1779_s27, %s1774_s21 }
  0x63   : > { %p1777_p10 = pnand %p1775_p9, %p1982_p8 }
  0x64   : > { %p1782_p2 = por %p1781_p4, %p1780_p12 }
  0x65   : > { %p1778_p11 = pneg %p1777_p10 }
  0x67   : > { %p1783_p3 = pnand %p1782_p2, %p1778_p11 }
  0x69   : > { %1786 = shalt.err (!%p1783_p3)
}
  0x6a   : > { %s1787_s25 = scalar_lea.vmem %s2104_s10, 512  ;;  %s1881_s14 = smov [#allocation8]  }
  0x6b   : > { %p1788_p7 = scmp.ne.s32.totalorder %s2104_s10, %s1787_s25  ;;  %s1792_s23 = sshll.u32 %s1881_s14, 4  ;;  %s1793_s23 = int_to_ptr.vmem [resolvable:$false] %s1792_s23 }
  0x6c   : > { %s1794_s20 = scalar_lea.vmem %s1793_s23, 1024  ;;  %p1795_p1 = scmp.lt.s32.totalorder %s2104_s10, %s1793_s23 }
  0x6d   : > { %p1790_p0 = pnand %p1788_p7, %p1982_p8  ;;  %p1796_p5 = scmp.lt.s32.totalorder %s1794_s20, %s1787_s25 }
  0x6f   : > { %p1791_p13 = pneg %p1790_p0  ;;  %p1797_p9 = por %p1796_p5, %p1795_p1 }
  0x71   : > { %p1798_p10 = pnand %p1797_p9, %p1791_p13 }
  0x73   : > { %1801 = shalt.err (!%p1798_p10)
}
  0x74   : > { %1555 = dma.hbm_to_vmem [thread:$0]  (!%p1970_p6), %s2086_s13, 512, %s2104_s10, %s225_s24, %s3415_s28, %s3415_s28, %s3414_s1  }
  0x75   : > { %p3418_p8 = scmp.ne.s32.totalorder %s3412_s12, 0 }
  0x77   : > { %248 = sbr.rel (%p3418_p8) target bundleno = 469 (0x1d5), region = 36 }
  0x7c   : > { %p3419_p11 = scmp.eq.s32.totalorder %s2009_s8, 0 }
  0x7e   : > { %1845 = dma.done.wait (%p3419_p11), [#allocation3], 512   ;;  %p3420_p12 = pmov %p3419_p11 }
  0x7f   : > { %s254_s9 = sand.u32 1, %s2009_s8   ;;  %s2139_s6 = sand.u32 1, %s1866_s16  }
  0x80   : > { %1847 = vsyncadd (%p3420_p12), [#allocation3], 4294966784  ;;  %s2142_s21 = sshll.u32 %s2139_s6, 5  ;;  %s255_s1 = scalar_lea.sflag [#allocation6], %s254_s9 }
  0x81   : > { %s2145_s28 = scalar_lea.vmem [#allocation5], %s2142_s21  ;;  %p3421_p6 = scmp.ne.s32.totalorder %s3408_s11, 0 }
  0x83   : > { %1849 = dma.done.wait (%p3421_p6), %s255_s1, 1024  }
  0x84   : > { %1851 = vsyncadd (%p3421_p6), %s255_s1, 4294966272  ;;  %s267_s12 = scalar_lea.vmem [#allocation7], %s2142_s21  ;;  %s273_s13 = scalar_lea.sflag [#allocation9], %s2139_s6 }
  0x85   : > { %s2154_s10 = scalar_lea.vmem [#allocation8], %s2142_s21 }
  0x86   : > { %1853 = dma.done.wait (%p3421_p6), %s273_s13, 512  }
  0x87   : > { %1855 = vsyncadd (%p3421_p6), %s273_s13, 4294966784  ;;  %v2160_v0 = vld [vmem:[%s267_s12 + $0x8] sm:$0xff]  ;;  %v2162_v1 = vld [vmem:[%s267_s12] sm:$0xff]  ;;  %s1882_s24 = smov 17   ;;  %s1883_s11 = smov 16   ;;  %v339_v23 = vlaneseq }
  0x88   : > { %335 = vrot.lane.b32.xlu1 %v2160_v0, %s1882_s24  ;;  %331 = vrot.lane.b32.xlu0 %v2162_v1, %s1882_s24  ;;  %v2168_v2 = vld [vmem:[%s267_s12 + $0x18] sm:$0xff]  ;;  %v2170_v3 = vld [vmem:[%s267_s12 + $0x10] sm:$0xff]  ;;  %s1884_s22 = smov 15   ;;  %s1885_s30 = smov 1   ;;  %v2299_v37 = vld [vmem:[#allocation2] sm:$0xff] }
  0x89   : > { %s1886_s27 = smov 127   ;;  %s1887_s26 = smov 113   ;;  %v963_v4 = vld [vmem:[%s2154_s10 + $0x10] sm:$0xff]  ;;  %v961_v5 = vld [vmem:[%s2154_s10] sm:$0xff]  ;;  %v964_v6 = vld [vmem:[%s2154_s10 + $0x18] sm:$0xff]  ;;  %v2286_v28 = vshrl.u32 %v339_v23, 7 }
  0x8a   : > { %s1888_s7 = smov 112   ;;  %s1889_s25 = smov 111   ;;  %v962_v7 = vld [vmem:[%s2154_s10 + $0x8] sm:$0xff]  ;;  %v317_v12 = vld [vmem:[%s2145_s28 + $0x10] sm:$0xff]  ;;  %v318_v13 = vld [vmem:[%s2145_s28 + $0x18] sm:$0xff]  ;;  %v2290_v32 = vand.u32 127, %v339_v23 }
  0x8b   : > { %v315_v14 = vld [vmem:[%s2145_s28] sm:$0xff]  ;;  %v2269_v15 = vmul.f32 0.35355338, %v317_v12  ;;  %v2271_v16 = vmul.f32 0.35355338, %v318_v13  ;;  %v316_v19 = vld [vmem:[%s2145_s28 + $0x8] sm:$0xff] }
  0x8c   : > { %337 = vrot.lane.b32.xlu1 %v2168_v2, %s1882_s24  ;;  %333 = vrot.lane.b32.xlu0 %v2170_v3, %s1882_s24  ;;  %v2274_v20 = vmul.f32 0.35355338, %v315_v14  ;;  %v2282_v24 = vmul.f32 0.35355338, %v316_v19  ;;  %3422 = vst [vmem:[#allocation16_spill] sm:$0xff] %v2290_v32  ;;  %v2297_v36 = vsub.s32 0, %v2286_v28 }
  0x8d   : > { %v547_v21 = vmul.f32 %v2170_v3, %v2269_v15  ;;  %v548_v22 = vmul.f32 %v2168_v2, %v2271_v16  ;;  %vm341_vm0 = vcmp.lt.s32.totalorder %v2290_v32, 17  ;;  %v2302_v41 = vld [vmem:[#allocation2 + $0x8] sm:$0xff]  ;;  %vm394_vm1 = vcmp.lt.s32.totalorder %v2290_v32, 16  ;;  %s310_s14 = scalar_lea.vmem [#allocation10], %s2142_s21  ;;  %s1529_s20 = sshll.u32 %s2009_s8, 9 }
  0x8e   : > { %v545_v27 = vmul.f32 %v2162_v1, %v2274_v20  ;;  %v546_v31 = vmul.f32 %v2160_v0, %v2282_v24  ;;  %3423 = vst [vmem:[#allocation17_spill] sm:$0xff] %v2297_v36  ;;  %v2310_v45 = vrot.slane %v2299_v37, %v2297_v36  ;;  %v2317_v50 = vrot.slane %v2302_v41, %v2297_v36  ;;  %s1364_s23 = sshll.u32 %s310_s14, 4  ;;  %s3283_s1 = scalar_lea.hbm %s3331_s4, %s1529_s20  ;;  %s3278_s23 = int_to_ptr.vmem [resolvable:$true] %s1364_s23 }
  0x8f   : > { %v561_v29 = vrot.slane %v547_v21, 4  ;;  %v567_v30 = vrot.slane %v548_v22, 4  ;;  %v429_v52 = vsub.s32 1, %v2286_v28  ;;  %v482_v53 = vsub.s32 2, %v2286_v28  ;;  %s1350_s28 = scalar_lea.sflag [#allocation4], %s2139_s6  ;;  %s1802_s8 = scalar_lea.vmem %s3278_s23, 512 }
  0x90   : > { %388 = vrot.lane.b32.xlu1 %v2170_v3, %s1883_s11  ;;  %386 = vrot.lane.b32.xlu0 %v2162_v1, %s1883_s11  ;;  %v549_v35 = vrot.slane %v545_v27, 4  ;;  %v555_v40 = vrot.slane %v546_v31, 4  ;;  %3424 = vst [vmem:[#allocation18_spill] sm:$0xff] %v2310_v45  ;;  %3425 = vst [vmem:[#allocation19_spill] sm:$0xff] %v2317_v50  ;;  %vm447_vm2 = vcmp.lt.s32.totalorder %v2290_v32, 15  ;;  %vm500_vm3 = vcmp.lt.s32.totalorder %v2290_v32, 1  ;;  %p1803_p4 = scmp.ne.s32.totalorder %s3278_s23, %s1802_s8 }
  0x91   : > { %v562_v38 = vadd.f32 %v561_v29, %v547_v21  ;;  %v568_v39 = vadd.f32 %v567_v30, %v548_v22  ;;  %v2355_v14 = vrot.slane %v2302_v41, %v429_v52  ;;  %v2365_v29 = vrot.slane %v2302_v41, %v482_v53  ;;  %p3530_p2 = scmp.ne.s32.totalorder %s3410_s29, 0  ;;  %s1890_s12 = smov [#allocation10]  }
  0x92   : > { %v550_v44 = vadd.f32 %v549_v35, %v545_v27  ;;  %v556_v49 = vadd.f32 %v555_v40, %v546_v31  ;;  %vm581_vm4 = vcmp.lt.s32.totalorder %v2290_v32, 127  ;;  %vm634_vm5 = vcmp.lt.s32.totalorder %v2290_v32, 113  ;;  %s1806_s13 = sshll.u32 %s1890_s12, 4  ;;  %s1807_s13 = int_to_ptr.vmem [resolvable:$false] %s1806_s13 }
  0x93   : > { %v563_v47 = vrot.slane %v562_v38, 2  ;;  %v569_v48 = vrot.slane %v568_v39, 2  ;;  %3427 = vst [vmem:[#allocation21_spill] sm:$0xff] %v2355_v14  ;;  %3431 = vst [vmem:[#allocation25_spill] sm:$0xff] %v2365_v29  ;;  %vm687_vm6 = vcmp.lt.s32.totalorder %v2290_v32, 112  ;;  %vm740_vm7 = vcmp.lt.s32.totalorder %v2290_v32, 111  ;;  %p1804_p3 = pnand %p1803_p4, %p3530_p2  ;;  %p1809_p0 = scmp.lt.s32.totalorder %s3278_s23, %s1807_s13 }
  0x94   : > { %392 = vrot.lane.b32.xlu1 %v2168_v2, %s1883_s11  ;;  %390 = vrot.lane.b32.xlu0 %v2160_v0, %s1883_s11  ;;  %v551_v58 = vrot.slane %v550_v44, 2 }
  0x95   : > { %p1805_p7 = pneg %p1804_p3 }
  0x98   : > { %441 = vrot.lane.b32.xlu1 %v2170_v3, %s1884_s22  ;;  %439 = vrot.lane.b32.xlu0 %v2162_v1, %s1884_s22 }
  0x9c   : > { %445 = vrot.lane.b32.xlu1 %v2168_v2, %s1884_s22  ;;  %443 = vrot.lane.b32.xlu0 %v2160_v0, %s1884_s22 }
  0xa0   : > { %494 = vrot.lane.b32.xlu1 %v2170_v3, %s1885_s30  ;;  %492 = vrot.lane.b32.xlu0 %v2162_v1, %s1885_s30 }
  0xa4   : > { %498 = vrot.lane.b32.xlu1 %v2168_v2, %s1885_s30  ;;  %496 = vrot.lane.b32.xlu0 %v2160_v0, %s1885_s30 }
  0xa8   : > { %575 = vrot.lane.b32.xlu1 %v2170_v3, %s1886_s27  ;;  %573 = vrot.lane.b32.xlu0 %v2162_v1, %s1886_s27 }
  0xac   : > { %579 = vrot.lane.b32.xlu1 %v2168_v2, %s1886_s27  ;;  %577 = vrot.lane.b32.xlu0 %v2160_v0, %s1886_s27 }
  0xb0   : > { %628 = vrot.lane.b32.xlu1 %v2170_v3, %s1887_s26  ;;  %626 = vrot.lane.b32.xlu0 %v2162_v1, %s1887_s26 }
  0xb4   : > { %632 = vrot.lane.b32.xlu1 %v2168_v2, %s1887_s26  ;;  %630 = vrot.lane.b32.xlu0 %v2160_v0, %s1887_s26 }
  0xb8   : > { %681 = vrot.lane.b32.xlu1 %v2170_v3, %s1888_s7  ;;  %679 = vrot.lane.b32.xlu0 %v2162_v1, %s1888_s7 }
  0xbc   : > { %685 = vrot.lane.b32.xlu1 %v2168_v2, %s1888_s7  ;;  %683 = vrot.lane.b32.xlu0 %v2160_v0, %s1888_s7 }
  0xc0   : > { %734 = vrot.lane.b32.xlu1 %v2170_v3, %s1889_s25  ;;  %732 = vrot.lane.b32.xlu0 %v2162_v1, %s1889_s25  ;;  %v564_v1 = vadd.f32 %v563_v47, %v562_v38  ;;  %v557_v3 = vrot.slane %v556_v49, 2  ;;  %v616_v47 = vsub.s32 5, %v2286_v28 }
  0xc2   : > { %v565_v21 = vrot.slane %v564_v1, 1  ;;  %v2362_v23 = vadd.f32 %v557_v3, %v556_v49  ;;  %v2398_v3 = vrot.slane %v2299_v37, %v616_v47 }
  0xc4   : > { %738 = vrot.lane.b32.xlu1 %v2168_v2, %s1889_s25  ;;  %736 = vrot.lane.b32.xlu0 %v2160_v0, %s1889_s25  ;;  %v570_v2 = vadd.f32 %v569_v48, %v568_v39  ;;  %3430 = vst [vmem:[#allocation24_spill] sm:$0xff] %v2362_v23  ;;  %3436 = vst [vmem:[#allocation30_spill] sm:$0xff] %v2398_v3 }
  0xc6   : > { %v571_v22 = vrot.slane %v570_v2, 1 }
  0xc8   : > { %975 = vrot.lane.b32.xlu1 %v963_v4, %s1882_s24  ;;  %973 = vrot.lane.b32.xlu0 %v961_v5, %s1882_s24 }
  0xcc   : > { %979 = vrot.lane.b32.xlu1 %v964_v6, %s1882_s24  ;;  %977 = vrot.lane.b32.xlu0 %v962_v7, %s1882_s24 }
  0xd0   : > { %1019 = vrot.lane.b32.xlu1 %v963_v4, %s1883_s11  ;;  %1017 = vrot.lane.b32.xlu0 %v961_v5, %s1883_s11 }
  0xd4   : > { %1023 = vrot.lane.b32.xlu1 %v964_v6, %s1883_s11  ;;  %1021 = vrot.lane.b32.xlu0 %v962_v7, %s1883_s11 }
  0xd8   : > { %1063 = vrot.lane.b32.xlu1 %v963_v4, %s1884_s22  ;;  %1061 = vrot.lane.b32.xlu0 %v961_v5, %s1884_s22 }
  0xdc   : > { %1067 = vrot.lane.b32.xlu1 %v964_v6, %s1884_s22  ;;  %1065 = vrot.lane.b32.xlu0 %v962_v7, %s1884_s22 }
  0xe0   : > { %1107 = vrot.lane.b32.xlu1 %v963_v4, %s1885_s30  ;;  %1105 = vrot.lane.b32.xlu0 %v961_v5, %s1885_s30 }
  0xe4   : > { %1111 = vrot.lane.b32.xlu1 %v964_v6, %s1885_s30  ;;  %1109 = vrot.lane.b32.xlu0 %v962_v7, %s1885_s30 }
  0xe8   : > { %1179 = vrot.lane.b32.xlu1 %v963_v4, %s1886_s27  ;;  %1177 = vrot.lane.b32.xlu0 %v961_v5, %s1886_s27 }
  0xec   : > { %1183 = vrot.lane.b32.xlu1 %v964_v6, %s1886_s27  ;;  %1181 = vrot.lane.b32.xlu0 %v962_v7, %s1886_s27 }
  0xf0   : > { %1223 = vrot.lane.b32.xlu1 %v963_v4, %s1887_s26  ;;  %1221 = vrot.lane.b32.xlu0 %v961_v5, %s1887_s26 }
  0xf4   : > { %1227 = vrot.lane.b32.xlu1 %v964_v6, %s1887_s26  ;;  %1225 = vrot.lane.b32.xlu0 %v962_v7, %s1887_s26 }
  0xf8   : > { %1267 = vrot.lane.b32.xlu1 %v963_v4, %s1888_s7  ;;  %1265 = vrot.lane.b32.xlu0 %v961_v5, %s1888_s7 }
  0xfa   : > { %v336_v8 = vpop.permute.xlu1 %335  ;;  %v332_v9 = vpop.permute.xlu0 %331 }
  0xfb   : > { %v344_v46 = vsel %vm341_vm0, %v336_v8, %v332_v9  ;;  %v342_v54 = vsel %vm341_vm0, %v332_v9, %v336_v8 }
  0xfc   : > { %1271 = vrot.lane.b32.xlu1 %v964_v6, %s1888_s7  ;;  %1269 = vrot.lane.b32.xlu0 %v962_v7, %s1888_s7  ;;  %v346_v59 = vmul.f32 %v344_v46, %v2274_v20 }
  0xfe   : > { %v338_v10 = vpop.permute.xlu1 %337  ;;  %v334_v11 = vpop.permute.xlu0 %333  ;;  %v350_v13 = vrot.slane %v346_v59, 4 }
  0xff   : > { %v345_v51 = vsel %vm341_vm0, %v338_v10, %v334_v11  ;;  %v343_v60 = vsel %vm341_vm0, %v334_v11, %v338_v10  ;;  %v535_v11 = vsub.s32 3, %v2286_v28 }
 0x100   : > { %1311 = vrot.lane.b32.xlu1 %v963_v4, %s1889_s25  ;;  %1309 = vrot.lane.b32.xlu0 %v961_v5, %s1889_s25  ;;  %v348_v0 = vmul.f32 %v345_v51, %v2269_v15  ;;  %v347_v4 = vmul.f32 %v342_v54, %v2282_v24  ;;  %v349_v8 = vmul.f32 %v343_v60, %v2271_v16 }
 0x101   : > { %v2371_v39 = vrot.slane %v2299_v37, %v535_v11  ;;  %v2376_v46 = vrot.slane %v2302_v41, %v535_v11  ;;  %v2380_v51 = vadd.f32 %v565_v21, %v564_v1 }
 0x102   : > { %v389_v17 = vpop.permute.xlu1 %388  ;;  %v387_v18 = vpop.permute.xlu0 %386  ;;  %v362_v19 = vrot.slane %v348_v0, 4  ;;  %v368_v31 = vrot.slane %v349_v8, 4 }
 0x103   : > { %3432 = vst [vmem:[#allocation26_spill] sm:$0xff] %v2371_v39  ;;  %3433 = vst [vmem:[#allocation27_spill] sm:$0xff] %v2376_v46 }
 0x104   : > { %1315 = vrot.lane.b32.xlu1 %v964_v6, %s1889_s25  ;;  %1313 = vrot.lane.b32.xlu0 %v962_v7, %s1889_s25  ;;  %v2346_v7 = vrot.slane %v2299_v37, %v429_v52  ;;  %v363_v49 = vadd.f32 %v362_v19, %v348_v0  ;;  %3434 = vst [vmem:[#allocation28_spill] sm:$0xff] %v2380_v51 }
 0x105   : > { %v2382_v52 = vadd.f32 %v571_v22, %v570_v2 }
 0x106   : > { %v393_v25 = vpop.permute.xlu1 %392  ;;  %v391_v26 = vpop.permute.xlu0 %390  ;;  %3426 = vst [vmem:[#allocation20_spill] sm:$0xff] %v2346_v7 }
 0x107   : > { %v396_v55 = vsel %vm394_vm1, %v389_v17, %v393_v25  ;;  %v398_v56 = vsel %vm394_vm1, %v393_v25, %v389_v17  ;;  %v395_v61 = vsel %vm394_vm1, %v387_v18, %v391_v26  ;;  %v397_v62 = vsel %vm394_vm1, %v391_v26, %v387_v18  ;;  %3435 = vst [vmem:[#allocation29_spill] sm:$0xff] %v2382_v52 }
 0x108   : > { %v401_v5 = vmul.f32 %v398_v56, %v2269_v15  ;;  %v402_v6 = vmul.f32 %v396_v55, %v2271_v16  ;;  %v399_v9 = vmul.f32 %v397_v62, %v2274_v20  ;;  %v400_v10 = vmul.f32 %v395_v61, %v2282_v24 }
 0x109   : > { %v2358_v17 = vrot.slane %v2299_v37, %v482_v53  ;;  %v2360_v18 = vadd.f32 %v551_v58, %v550_v44  ;;  %v356_v25 = vrot.slane %v347_v4, 4  ;;  %v351_v44 = vadd.f32 %v350_v13, %v346_v59 }
 0x10a   : > { %v2292_v33 = vpop.permute.xlu1 %441  ;;  %v2294_v34 = vpop.permute.xlu0 %439  ;;  %v415_v26 = vrot.slane %v401_v5, 4  ;;  %v421_v27 = vrot.slane %v402_v6, 4  ;;  %v403_v35 = vrot.slane %v399_v9, 4  ;;  %v409_v38 = vrot.slane %v400_v10, 4 }
 0x10b   : > { %3428 = vst [vmem:[#allocation22_spill] sm:$0xff] %v2358_v17  ;;  %3429 = vst [vmem:[#allocation23_spill] sm:$0xff] %v2360_v18  ;;  %v357_v54 = vadd.f32 %v356_v25, %v347_v4  ;;  %v369_v59 = vadd.f32 %v368_v31, %v349_v8  ;;  %v352_v1 = vrot.slane %v351_v44, 2  ;;  %v669_v4 = vsub.s32 6, %v2286_v28 }
 0x10c   : > { %v416_v55 = vadd.f32 %v415_v26, %v401_v5  ;;  %v422_v56 = vadd.f32 %v421_v27, %v402_v6  ;;  %v404_v60 = vadd.f32 %v403_v35, %v399_v9  ;;  %v410_v61 = vadd.f32 %v409_v38, %v400_v10 }
 0x10d   : > { %v3347_v5 = vsub.s32 7, %v2286_v28  ;;  %v364_v6 = vrot.slane %v363_v49, 2  ;;  %v2413_v13 = vrot.slane %v2302_v41, %v616_v47  ;;  %v358_v19 = vrot.slane %v357_v54, 2 }
 0x10e   : > { %v2304_v42 = vpop.permute.xlu1 %445  ;;  %v2306_v43 = vpop.permute.xlu0 %443  ;;  %v417_v9 = vrot.slane %v416_v55, 2  ;;  %v423_v10 = vrot.slane %v422_v56, 2  ;;  %v370_v21 = vrot.slane %v369_v59, 2  ;;  %v405_v22 = vrot.slane %v404_v60, 2 }
 0x10f   : > { %v451_v58 = vsel %vm447_vm2, %v2304_v42, %v2292_v33  ;;  %v449_v62 = vsel %vm447_vm2, %v2292_v33, %v2304_v42  ;;  %v448_v33 = vsel %vm447_vm2, %v2294_v34, %v2306_v43  ;;  %v450_v42 = vsel %vm447_vm2, %v2306_v43, %v2294_v34  ;;  %3437 = vst [vmem:[#allocation31_spill] sm:$0xff] %v2413_v13 }
 0x110   : > { %v454_v8 = vmul.f32 %v451_v58, %v2269_v15  ;;  %v455_v11 = vmul.f32 %v449_v62, %v2271_v16  ;;  %v411_v25 = vrot.slane %v410_v61, 2  ;;  %v353_v26 = vadd.f32 %v352_v1, %v351_v44 }
 0x111   : > { %v452_v27 = vmul.f32 %v450_v42, %v2274_v20  ;;  %v453_v31 = vmul.f32 %v448_v33, %v2282_v24  ;;  %v2418_v35 = vrot.slane %v2299_v37, %v669_v4  ;;  %v365_v34 = vadd.f32 %v364_v6, %v363_v49 }
 0x112   : > { %v2330_v57 = vpop.permute.xlu1 %494  ;;  %v2339_v63 = vpop.permute.xlu0 %492  ;;  %v468_v43 = vrot.slane %v454_v8, 4  ;;  %v2423_v58 = vrot.slane %v2302_v41, %v669_v4  ;;  %v2428_v47 = vrot.slane %v2299_v37, %v3347_v5  ;;  %v418_v44 = vadd.f32 %v417_v9, %v416_v55 }
 0x113   : > { %3438 = vst [vmem:[#allocation32_spill] sm:$0xff] %v2418_v35  ;;  %v424_v62 = vadd.f32 %v423_v10, %v422_v56  ;;  %v474_v1 = vrot.slane %v455_v11, 4  ;;  %v359_v6 = vadd.f32 %v358_v19, %v357_v54  ;;  %v371_v42 = vadd.f32 %v370_v21, %v369_v59 }
 0x114   : > { %3439 = vst [vmem:[#allocation33_spill] sm:$0xff] %v2423_v58  ;;  %3440 = vst [vmem:[#allocation34_spill] sm:$0xff] %v2428_v47  ;;  %v406_v53 = vadd.f32 %v405_v22, %v404_v60  ;;  %v412_v4 = vadd.f32 %v411_v25, %v410_v61  ;;  %v354_v48 = vrot.slane %v353_v26, 1  ;;  %v456_v36 = vrot.slane %v452_v27, 4 }
 0x115   : > { %v462_v23 = vrot.slane %v453_v31, 4  ;;  %v469_v55 = vadd.f32 %v468_v43, %v454_v8  ;;  %v366_v59 = vrot.slane %v365_v34, 1  ;;  %v419_v60 = vrot.slane %v418_v44, 1 }
 0x116   : > { %v2352_v12 = vpop.permute.xlu1 %498  ;;  %v2367_v30 = vpop.permute.xlu0 %496  ;;  %v425_v61 = vrot.slane %v424_v62, 1  ;;  %v475_v10 = vadd.f32 %v474_v1, %v455_v11  ;;  %v413_v8 = vrot.slane %v412_v4, 1  ;;  %v360_v22 = vrot.slane %v359_v6, 1 }
 0x117   : > { %v504_v33 = vsel %vm500_vm3, %v2352_v12, %v2330_v57  ;;  %v502_v37 = vsel %vm500_vm3, %v2330_v57, %v2352_v12  ;;  %v501_v9 = vsel %vm500_vm3, %v2339_v63, %v2367_v30  ;;  %v503_v54 = vsel %vm500_vm3, %v2367_v30, %v2339_v63 }
 0x118   : > { %v507_v56 = vmul.f32 %v504_v33, %v2269_v15  ;;  %v372_v57 = vrot.slane %v371_v42, 1  ;;  %v407_v12 = vrot.slane %v406_v53, 1  ;;  %v508_v19 = vmul.f32 %v502_v37, %v2271_v16 }
 0x119   : > { %v457_v25 = vadd.f32 %v456_v36, %v452_v27  ;;  %v505_v43 = vmul.f32 %v503_v54, %v2274_v20  ;;  %v506_v33 = vmul.f32 %v501_v9, %v2282_v24  ;;  %v355_v30 = vadd.f32 %v354_v48, %v353_v26 }
 0x11a   : > { %v2373_v40 = vpop.permute.xlu1 %575  ;;  %v2395_v2 = vpop.permute.xlu0 %573  ;;  %v470_v5 = vrot.slane %v469_v55, 2  ;;  %v463_v18 = vadd.f32 %v462_v23, %v453_v31  ;;  %v521_v47 = vrot.slane %v507_v56, 4  ;;  %v367_v11 = vadd.f32 %v366_v59, %v365_v34 }
 0x11b   : > { %v420_v1 = vadd.f32 %v419_v60, %v418_v44  ;;  %v426_v58 = vadd.f32 %v425_v61, %v424_v62  ;;  %v476_v52 = vrot.slane %v475_v10, 2  ;;  %v373_v37 = vadd.f32 %v372_v57, %v371_v42 }
 0x11c   : > { %v408_v35 = vadd.f32 %v407_v12, %v406_v53  ;;  %v414_v51 = vadd.f32 %v413_v8, %v412_v4  ;;  %v527_v36 = vrot.slane %v508_v19, 4  ;;  %v361_v27 = vadd.f32 %v360_v22, %v359_v6 }
 0x11d   : > { %v458_v54 = vrot.slane %v457_v25, 2  ;;  %v509_v13 = vrot.slane %v505_v43, 4  ;;  %v515_v9 = vrot.slane %v506_v33, 4  ;;  %v2460_v48 = vmul.f32 %v2310_v45, %v355_v30 }
 0x11e   : > { %v2393_v0 = vpop.permute.xlu1 %579  ;;  %v2434_v49 = vpop.permute.xlu0 %577  ;;  %v471_v23 = vadd.f32 %v470_v5, %v469_v55  ;;  %v464_v26 = vrot.slane %v463_v18, 2  ;;  %v522_v31 = vadd.f32 %v521_v47, %v507_v56  ;;  %v2463_v44 = vmul.f32 %v2310_v45, %v367_v11 }
 0x11f   : > { %v2466_v53 = vmul.f32 %v2346_v7, %v420_v1  ;;  %v2469_v62 = vmul.f32 %v2355_v14, %v426_v58  ;;  %v477_v6 = vadd.f32 %v476_v52, %v475_v10  ;;  %v2474_v4 = vmul.f32 %v2317_v50, %v373_v37 }
 0x120   : > { %v2477_v5 = vmul.f32 %v2346_v7, %v408_v35  ;;  %v2480_v47 = vmul.f32 %v2355_v14, %v414_v51  ;;  %v528_v55 = vadd.f32 %v527_v36, %v508_v19  ;;  %v459_v56 = vadd.f32 %v458_v54, %v457_v25 }
 0x121   : > { %3441 = vst [vmem:[#allocation35_spill] sm:$0xff] %v2474_v4  ;;  %v510_v59 = vadd.f32 %v509_v13, %v505_v43  ;;  %v516_v60 = vadd.f32 %v515_v9, %v506_v33  ;;  %v583_v52 = vsel %vm581_vm4, %v2373_v40, %v2393_v0  ;;  %v2487_v58 = vmul.f32 %v2317_v50, %v361_v27 }
 0x122   : > { %v2420_v38 = vpop.permute.xlu1 %628  ;;  %v2455_v63 = vpop.permute.xlu0 %626  ;;  %v472_v61 = vrot.slane %v471_v23, 1  ;;  %v465_v10 = vadd.f32 %v464_v26, %v463_v18  ;;  %v523_v57 = vrot.slane %v522_v31, 2  ;;  %v787_v35 = vmax.f32 %v2463_v44, %v2466_v53 }
 0x123   : > { %v788_v51 = vmax.f32 %v2474_v4, %v2469_v62  ;;  %v478_v12 = vrot.slane %v477_v6, 1  ;;  %v3442_v13 = vsub.s32 7, %v2286_v28  ;;  %v529_v18 = vrot.slane %v528_v55, 2 }
 0x124   : > { %v588_v25 = vmul.f32 %v583_v52, %v2269_v15  ;;  %v460_v33 = vrot.slane %v459_v56, 1  ;;  %v511_v30 = vrot.slane %v510_v59, 2  ;;  %v517_v11 = vrot.slane %v516_v60, 2 }
 0x125   : > { %v2496_v8 = vrot.slane %v2302_v41, %v3442_v13  ;;  %v585_v28 = vsel %vm581_vm4, %v2393_v0, %v2373_v40  ;;  %v473_v1 = vadd.f32 %v472_v61, %v471_v23  ;;  %v466_v37 = vrot.slane %v465_v10, 1 }
 0x126   : > { %v2451_v21 = vpop.permute.xlu1 %632  ;;  %v2471_v42 = vpop.permute.xlu0 %630  ;;  %v524_v36 = vadd.f32 %v523_v57, %v522_v31  ;;  %v479_v54 = vadd.f32 %v478_v12, %v477_v6  ;;  %v582_v9 = vsel %vm581_vm4, %v2395_v2, %v2434_v49  ;;  %v584_v40 = vsel %vm581_vm4, %v2434_v49, %v2395_v2 }
 0x127   : > { %3443 = vst [vmem:[#allocation36_spill] sm:$0xff] %v2496_v8  ;;  %v636_v27 = vsel %vm634_vm5, %v2420_v38, %v2451_v21  ;;  %v638_v0 = vsel %vm634_vm5, %v2451_v21, %v2420_v38  ;;  %v530_v23 = vadd.f32 %v529_v18, %v528_v55  ;;  %v589_v26 = vmul.f32 %v585_v28, %v2271_v16 }
 0x128   : > { %v602_v31 = vrot.slane %v588_v25, 4  ;;  %v512_v52 = vadd.f32 %v511_v30, %v510_v59  ;;  %v518_v61 = vadd.f32 %v517_v11, %v516_v60  ;;  %v641_v57 = vmul.f32 %v636_v27, %v2269_v15 }
 0x129   : > { %v525_v49 = vrot.slane %v524_v36, 1  ;;  %v586_v12 = vmul.f32 %v582_v9, %v2274_v20  ;;  %v587_v38 = vmul.f32 %v584_v40, %v2282_v24  ;;  %v642_v21 = vmul.f32 %v638_v0, %v2271_v16 }
 0x12a   : > { %v682_v34 = vpop.permute.xlu1 %681  ;;  %v2507_v41 = vpop.permute.xlu0 %679  ;;  %v2536_v13 = vmul.f32 %v2358_v17, %v473_v1  ;;  %v461_v18 = vadd.f32 %v460_v33, %v459_v56  ;;  %v467_v28 = vadd.f32 %v466_v37, %v465_v10  ;;  %v531_v30 = vrot.slane %v530_v23, 1 }
 0x12b   : > { %v603_v11 = vadd.f32 %v602_v31, %v588_v25  ;;  %v608_v27 = vrot.slane %v589_v26, 4  ;;  %v513_v9 = vrot.slane %v512_v52, 1  ;;  %v519_v40 = vrot.slane %v518_v61, 1 }
 0x12c   : > { %v655_v0 = vrot.slane %v641_v57, 4  ;;  %v526_v22 = vadd.f32 %v525_v49, %v524_v36  ;;  %v590_v19 = vrot.slane %v586_v12, 4  ;;  %v596_v1 = vrot.slane %v587_v38, 4 }
 0x12d   : > { %v661_v14 = vrot.slane %v642_v21, 4  ;;  %v2544_v56 = vmax.f32 %v787_v35, %v2536_v13  ;;  %v2547_v10 = vmul.f32 %v2358_v17, %v461_v18  ;;  %v2550_v25 = vmul.f32 %v2365_v29, %v467_v28 }
 0x12e   : > { %v686_v43 = vpop.permute.xlu1 %685  ;;  %v684_v60 = vpop.permute.xlu0 %683  ;;  %v532_v37 = vadd.f32 %v531_v30, %v530_v23  ;;  %v609_v31 = vadd.f32 %v608_v27, %v589_v26  ;;  %v2555_v49 = vadd.f32 %v513_v9, %v512_v52  ;;  %v2557_v50 = vadd.f32 %v519_v40, %v518_v61 }
 0x12f   : > { %v689_v6 = vsel %vm687_vm6, %v682_v34, %v686_v43  ;;  %v691_v2 = vsel %vm687_vm6, %v686_v43, %v682_v34  ;;  %v2541_v43 = vmul.f32 %v2365_v29, %v479_v54  ;;  %v604_v54 = vrot.slane %v603_v11, 2 }
 0x130   : > { %v694_v59 = vmul.f32 %v689_v6, %v2269_v15  ;;  %v695_v34 = vmul.f32 %v691_v2, %v2271_v16  ;;  %v656_v35 = vadd.f32 %v655_v0, %v641_v57  ;;  %v2560_v18 = vmul.f32 %v2371_v39, %v526_v22 }
 0x131   : > { %v2553_v36 = vmax.f32 %v788_v51, %v2541_v43  ;;  %v591_v28 = vadd.f32 %v590_v19, %v586_v12  ;;  %v2562_v29 = vadd.f32 %v596_v1, %v587_v38  ;;  %v662_v23 = vadd.f32 %v661_v14, %v642_v21 }
 0x132   : > { %v735_v55 = vpop.permute.xlu1 %734  ;;  %v708_v33 = vrot.slane %v694_v59, 4  ;;  %v714_v6 = vrot.slane %v695_v34, 4  ;;  %v733_v7 = vpop.permute.xlu0 %732  ;;  %v635_v26 = vsel %vm634_vm5, %v2455_v63, %v2471_v42  ;;  %v2573_v57 = vmul.f32 %v2376_v46, %v532_v37 }
 0x133   : > { %v605_v22 = vadd.f32 %v604_v54, %v603_v11  ;;  %v610_v19 = vrot.slane %v609_v31, 2  ;;  %v657_v38 = vrot.slane %v656_v35, 2  ;;  %v637_v14 = vsel %vm634_vm5, %v2471_v42, %v2455_v63 }
 0x134   : > { %v709_v51 = vadd.f32 %v708_v33, %v694_v59  ;;  %v715_v12 = vadd.f32 %v714_v6, %v695_v34  ;;  %v592_v30 = vrot.slane %v591_v28, 2  ;;  %v598_v27 = vrot.slane %v2562_v29, 2 }
 0x135   : > { %v639_v9 = vmul.f32 %v635_v26, %v2274_v20  ;;  %v688_v11 = vsel %vm687_vm6, %v2507_v41, %v684_v60  ;;  %v606_v33 = vrot.slane %v605_v22, 1  ;;  %v611_v63 = vadd.f32 %v610_v19, %v609_v31 }
 0x136   : > { %v739_v2 = vpop.permute.xlu1 %738  ;;  %v710_v40 = vrot.slane %v709_v51, 2  ;;  %v737_v1 = vpop.permute.xlu0 %736  ;;  %v716_v42 = vrot.slane %v715_v12, 2  ;;  %v690_v37 = vsel %vm687_vm6, %v684_v60, %v2507_v41 }
 0x137   : > { %v742_v52 = vsel %vm740_vm7, %v735_v55, %v739_v2  ;;  %v744_v61 = vsel %vm740_vm7, %v739_v2, %v735_v55  ;;  %v663_v55 = vrot.slane %v662_v23, 2  ;;  %v741_v17 = vsel %vm740_vm7, %v733_v7, %v737_v1 }
 0x138   : > { %v747_v21 = vmul.f32 %v742_v52, %v2269_v15  ;;  %v748_v59 = vmul.f32 %v744_v61, %v2271_v16  ;;  %v640_v15 = vmul.f32 %v637_v14, %v2282_v24  ;;  %v658_v16 = vadd.f32 %v657_v38, %v656_v35 }
 0x139   : > { %v664_v26 = vadd.f32 %v663_v55, %v662_v23  ;;  %v643_v52 = vrot.slane %v639_v9, 4  ;;  %v692_v61 = vmul.f32 %v688_v11, %v2274_v20  ;;  %v711_v31 = vadd.f32 %v710_v40, %v709_v51 }
 0x13a   : > { %v761_v34 = vrot.slane %v747_v21, 4  ;;  %v767_v0 = vrot.slane %v748_v59, 4  ;;  %v2590_v2 = vpop.permute.xlu1 %975  ;;  %v743_v35 = vsel %vm740_vm7, %v737_v1, %v733_v7  ;;  %v612_v38 = vrot.slane %v611_v63, 1 }
 0x13b   : > { %3444 = vst [vmem:[#allocation37_spill] sm:$0xff] %v2590_v2  ;;  %v649_v45 = vrot.slane %v640_v15, 4  ;;  %v717_v41 = vadd.f32 %v716_v42, %v715_v12  ;;  %v693_v60 = vmul.f32 %v690_v37, %v2282_v24  ;;  %v795_v23 = vmax.f32 %v2544_v56, %v2560_v18 }
 0x13c   : > { %v762_v54 = vadd.f32 %v761_v34, %v747_v21  ;;  %v768_v6 = vadd.f32 %v767_v0, %v748_v59  ;;  %v659_v21 = vrot.slane %v658_v16, 1  ;;  %v745_v55 = vmul.f32 %v741_v17, %v2274_v20 }
 0x13d   : > { %v796_v51 = vmax.f32 %v2553_v36, %v2573_v57  ;;  %v665_v40 = vrot.slane %v664_v26, 1  ;;  %v746_v34 = vmul.f32 %v743_v35, %v2282_v24  ;;  %v607_v7 = vadd.f32 %v606_v33, %v605_v22  ;;  %v3447_v35 = vld [vmem:[#allocation32_spill] sm:$0xff] }
 0x13e   : > { %v763_v19 = vrot.slane %v762_v54, 2  ;;  %v769_v14 = vrot.slane %v768_v6, 2  ;;  %v644_v0 = vadd.f32 %v643_v52, %v639_v9  ;;  %v712_v1 = vrot.slane %v711_v31, 1  ;;  %v2604_v42 = vpop.permute.xlu1 %979  ;;  %v3445_v52 = vld [vmem:[#allocation31_spill] sm:$0xff] }
 0x13f   : > { %v696_v12 = vrot.slane %v692_v61, 4  ;;  %v613_v37 = vadd.f32 %v612_v38, %v611_v63  ;;  %v650_v32 = vadd.f32 %v649_v45, %v640_v15  ;;  %v718_v56 = vrot.slane %v717_v41, 1 }
 0x140   : > { %v764_v59 = vadd.f32 %v763_v19, %v762_v54  ;;  %v770_v11 = vadd.f32 %v769_v14, %v768_v6  ;;  %v702_v2 = vrot.slane %v693_v60, 4  ;;  %v593_v54 = vadd.f32 %v592_v30, %v591_v28  ;;  %v3446_v30 = vld [vmem:[#allocation28_spill] sm:$0xff] }
 0x141   : > { %v660_v19 = vadd.f32 %v659_v21, %v658_v16  ;;  %v749_v17 = vrot.slane %v745_v55, 4  ;;  %v599_v36 = vadd.f32 %v598_v27, %v2562_v29  ;;  %v666_v4 = vadd.f32 %v665_v40, %v664_v26  ;;  %v3449_v21 = vld [vmem:[#allocation29_spill] sm:$0xff] }
 0x142   : > { %v765_v20 = vrot.slane %v764_v59, 1  ;;  %v771_v6 = vrot.slane %v770_v11, 1  ;;  %v755_v14 = vrot.slane %v746_v34, 4  ;;  %v2608_v24 = vmul.f32 %v2398_v3, %v607_v7  ;;  %v2617_v26 = vpop.permute.xlu1 %1019  ;;  %v3450_v7 = vld [vmem:[#allocation33_spill] sm:$0xff] }
 0x143   : > { %v645_v22 = vrot.slane %v644_v0, 2  ;;  %v713_v9 = vadd.f32 %v712_v1, %v711_v31  ;;  %v697_v33 = vadd.f32 %v696_v12, %v692_v61  ;;  %v2611_v63 = vmul.f32 %v3445_v52, %v613_v37  ;;  %3448 = vst [vmem:[#allocation28_spill] sm:$0xff] %v2617_v26  ;;  %v2623_v61 = vld [vmem:[#allocation2 + $0x10] ss:$0 sm:$0xff] }
 0x144   : > { %v651_v45 = vrot.slane %v650_v32, 2  ;;  %v719_v15 = vadd.f32 %v718_v56, %v717_v41  ;;  %v703_v28 = vadd.f32 %v702_v2, %v693_v60  ;;  %v799_v16 = vmax.f32 %v795_v23, %v3446_v30  ;;  %3451 = vst [vmem:[#allocation29_spill] sm:$0xff] %v2623_v61  ;;  %v3452_v60 = vld [vmem:[#allocation34_spill] sm:$0xff] }
 0x145   : > { %v2615_v38 = vmul.f32 %v3447_v35, %v660_v19  ;;  %v766_v29 = vadd.f32 %v765_v20, %v764_v59  ;;  %v750_v27 = vadd.f32 %v749_v17, %v745_v55  ;;  %v800_v40 = vmax.f32 %v796_v51, %v3449_v21  ;;  %v2629_v59 = vld [vmem:[#allocation2 + $0x18] ss:$0 sm:$0xff]  ;;  %v2631_v55 = vpop.permute.xlu0 %973 }
 0x146   : > { %v2621_v31 = vmul.f32 %v3450_v7, %v666_v4  ;;  %v772_v1 = vadd.f32 %v771_v6, %v770_v11  ;;  %v756_v12 = vadd.f32 %v755_v14, %v746_v34  ;;  %v803_v2 = vmax.f32 %v799_v16, %v2608_v24  ;;  %3453 = vst [vmem:[#allocation38_spill] sm:$0xff] %v2629_v59  ;;  %v2650_v16 = vpop.permute.xlu1 %1023 }
 0x147   : > { %v646_v41 = vadd.f32 %v645_v22, %v644_v0  ;;  %v2627_v23 = vmul.f32 %v3452_v60, %v713_v9  ;;  %v698_v37 = vrot.slane %v697_v33, 2  ;;  %3454 = vst [vmem:[#allocation39_spill] sm:$0xff] %v2631_v55  ;;  %v804_v51 = vmax.f32 %v800_v40, %v2611_v63  ;;  %3455 = vst [vmem:[#allocation40_spill] sm:$0xff] %v2650_v16  ;;  %v3460_v16 = vld [vmem:[#allocation24_spill] sm:$0xff] }
 0x148   : > { %v652_v56 = vadd.f32 %v651_v45, %v650_v32  ;;  %v2635_v4 = vmul.f32 %v2496_v8, %v719_v15  ;;  %v704_v19 = vrot.slane %v703_v28, 2  ;;  %v594_v11 = vrot.slane %v593_v54, 1 }
 0x149   : > { %v807_v34 = vmax.f32 %v803_v2, %v2615_v38  ;;  %v2639_v0 = vmul.f32 %v2623_v61, %v766_v29  ;;  %v751_v20 = vrot.slane %v750_v27, 2  ;;  %v600_v17 = vrot.slane %v599_v36, 1 }
 0x14a   : > { %v808_v6 = vmax.f32 %v804_v51, %v2621_v31  ;;  %v2643_v14 = vmul.f32 %v2629_v59, %v772_v1  ;;  %v757_v22 = vrot.slane %v756_v12, 2  ;;  %v2647_v32 = vmul.f32 %v2371_v39, %v2555_v49 }
 0x14b   : > { %v647_v9 = vrot.slane %v646_v41, 1  ;;  %v811_v45 = vmax.f32 %v807_v34, %v2627_v23  ;;  %v699_v15 = vadd.f32 %v698_v37, %v697_v33  ;;  %v2654_v29 = vmul.f32 %v2376_v46, %v2557_v50  ;;  %v2664_v37 = vpop.permute.xlu0 %977 }
 0x14c   : > { %v653_v40 = vrot.slane %v652_v56, 1  ;;  %v812_v2 = vmax.f32 %v808_v6, %v2635_v4  ;;  %v705_v1 = vadd.f32 %v704_v19, %v703_v28  ;;  %v3456_v51 = vmax.f32 %v2460_v48, %v2477_v5 }
 0x14d   : > { %v595_v39 = vadd.f32 %v594_v11, %v593_v54  ;;  %v2662_v26 = vmax.f32 %v811_v45, %v2639_v0  ;;  %v752_v33 = vadd.f32 %v751_v20, %v750_v27  ;;  %v3457_v50 = vmax.f32 %v2487_v58, %v2480_v47 }
 0x14e   : > { %v789_v49 = vmax.f32 %v3456_v51, %v2547_v10  ;;  %v601_v46 = vadd.f32 %v600_v17, %v599_v36  ;;  %v2671_v28 = vmax.f32 %v812_v2, %v2643_v14  ;;  %v758_v19 = vadd.f32 %v757_v22, %v756_v12  ;;  %v3458_v51 = vld [vmem:[#allocation23_spill] sm:$0xff] }
 0x14f   : > { %v790_v34 = vmax.f32 %v3457_v50, %v2550_v25  ;;  %v3459_v54 = vrot.slane %v3458_v51, 1  ;;  %v648_v27 = vadd.f32 %v647_v9, %v646_v41  ;;  %v700_v20 = vrot.slane %v699_v15, 1 }
 0x150   : > { %v793_v6 = vmax.f32 %v789_v49, %v2647_v32  ;;  %v3461_v55 = vrot.slane %v3460_v16, 1  ;;  %v654_v36 = vadd.f32 %v653_v40, %v652_v56  ;;  %v706_v17 = vrot.slane %v705_v1, 1  ;;  %v2690_v49 = vpop.permute.xlu1 %1063 }
 0x151   : > { %v2677_v11 = vadd.f32 %v3459_v54, %v3458_v51  ;;  %v794_v45 = vmax.f32 %v790_v34, %v2654_v29  ;;  %v2686_v12 = vmul.f32 %v2398_v3, %v595_v39  ;;  %v831_v22 = vsub.f32 %v2466_v53, %v2662_v26  ;;  %v2703_v53 = vpop.permute.xlu0 %1017 }
 0x152   : > { %v2683_v50 = vadd.f32 %v3461_v55, %v3460_v16  ;;  %v753_v2 = vrot.slane %v752_v33, 1  ;;  %v2693_v41 = vmul.f32 %v3445_v52, %v601_v46  ;;  %v832_v9 = vsub.f32 %v2469_v62, %v2671_v28 }
 0x153   : > { %v759_v34 = vrot.slane %v758_v19, 1  ;;  %v797_v55 = vmax.f32 %v793_v6, %v2677_v11  ;;  %v2699_v56 = vmul.f32 %v3447_v35, %v648_v27  ;;  %v701_v39 = vadd.f32 %v700_v20, %v699_v15 }
 0x154   : > { %v843_v16 = vsub.f32 %v2536_v13, %v2662_v26  ;;  %v798_v40 = vmax.f32 %v794_v45, %v2683_v50  ;;  %v2707_v46 = vmul.f32 %v3450_v7, %v654_v36  ;;  %v707_v51 = vadd.f32 %v706_v17, %v705_v1 }
 0x155   : > { %v844_v62 = vsub.f32 %v2541_v43, %v2671_v28  ;;  %v801_v6 = vmax.f32 %v797_v55, %v2686_v12  ;;  %v837_v54 = vmul.f32 1.442695, %v831_v22  ;;  %v855_v15 = vsub.f32 %v2560_v18, %v2662_v26  ;;  %v2723_v22 = vpop.permute.xlu1 %1067 }
 0x156   : > { %v754_v27 = vadd.f32 %v753_v2, %v752_v33  ;;  %v802_v13 = vmax.f32 %v798_v40, %v2693_v41  ;;  %v839_v20 = vmul.f32 1.442695, %v832_v9  ;;  %v856_v45 = vsub.f32 %v2573_v57, %v2671_v28 }
 0x157   : > { %v760_v35 = vadd.f32 %v759_v34, %v758_v19  ;;  %v805_v36 = vmax.f32 %v801_v6, %v2699_v56  ;;  %v2719_v1 = vmul.f32 %v3452_v60, %v701_v39  ;;  %v849_v43 = vmul.f32 1.442695, %v843_v16 }
 0x158   : > { %v867_v17 = vsub.f32 %v3446_v30, %v2662_v26  ;;  %v806_v18 = vmax.f32 %v802_v13, %v2707_v46  ;;  %v2727_v33 = vmul.f32 %v2496_v8, %v707_v51  ;;  %v851_v2 = vmul.f32 1.442695, %v844_v62  ;;  %v2736_v30 = vpop.permute.xlu0 %1021 }
 0x159   : > { %v868_v57 = vsub.f32 %v3449_v21, %v2671_v28  ;;  %1608 = vpow2.f32 %v837_v54  ;;  %v861_v19 = vmul.f32 1.442695, %v855_v15  ;;  %v879_v9 = vsub.f32 %v2608_v24, %v2662_v26  ;;  %v2754_v15 = vpop.permute.xlu1 %1107 }
 0x15a   : > { %v2734_v34 = vmul.f32 %v2623_v61, %v754_v27  ;;  %1610 = vpow2.f32 %v839_v20  ;;  %v863_v55 = vmul.f32 1.442695, %v856_v45  ;;  %v880_v39 = vsub.f32 %v2611_v63, %v2671_v28 }
 0x15b   : > { %v2741_v16 = vmul.f32 %v2629_v59, %v760_v35  ;;  %v809_v21 = vmax.f32 %v805_v36, %v2719_v1  ;;  %1612 = vpow2.f32 %v849_v43  ;;  %v873_v40 = vmul.f32 1.442695, %v867_v17 }
 0x15c   : > { %v891_v24 = vsub.f32 %v2615_v38, %v2662_v26  ;;  %v810_v51 = vmax.f32 %v806_v18, %v2727_v33  ;;  %1614 = vpow2.f32 %v851_v2  ;;  %v875_v62 = vmul.f32 1.442695, %v868_v57  ;;  %v2763_v45 = vpop.permute.xlu0 %1061 }
 0x15d   : > { %v892_v6 = vsub.f32 %v2621_v31, %v2671_v28  ;;  %1616 = vpow2.f32 %v861_v19  ;;  %v885_v54 = vmul.f32 1.442695, %v879_v9  ;;  %v903_v63 = vsub.f32 %v2627_v23, %v2662_v26  ;;  %v2773_v57 = vpop.permute.xlu1 %1111 }
 0x15e   : > { %v2752_v35 = vmax.f32 %v809_v21, %v2734_v34  ;;  %1618 = vpow2.f32 %v863_v55  ;;  %v887_v27 = vmul.f32 1.442695, %v880_v39  ;;  %v904_v38 = vsub.f32 %v2635_v4, %v2671_v28 }
 0x15f   : > { %v2759_v13 = vmax.f32 %v810_v51, %v2741_v16  ;;  %1620 = vpow2.f32 %v873_v40  ;;  %v897_v31 = vmul.f32 1.442695, %v891_v24  ;;  %v915_v20 = vsub.f32 %v2639_v0, %v2662_v26 }
 0x160   : > { %1622 = vpow2.f32 %v875_v62  ;;  %v899_v23 = vmul.f32 1.442695, %v892_v6  ;;  %v916_v36 = vsub.f32 %v2643_v14, %v2671_v28  ;;  %v909_v43 = vmul.f32 1.442695, %v903_v63  ;;  %v3462_v14 = vld [vmem:[#allocation35_spill] sm:$0xff]  ;;  %v2779_v39 = vpop.permute.xlu0 %1065 }
 0x161   : > { %1624 = vpow2.f32 %v885_v54  ;;  %v829_v4 = vsub.f32 %v2477_v5, %v2752_v35  ;;  %v911_v17 = vmul.f32 1.442695, %v904_v38  ;;  %v830_v18 = vsub.f32 %v2480_v47, %v2759_v13  ;;  %v2797_v54 = vpop.permute.xlu1 %1179 }
 0x162   : > { %1626 = vpow2.f32 %v887_v27  ;;  %v921_v2 = vmul.f32 1.442695, %v915_v20  ;;  %v819_v0 = vsub.f32 %v2463_v44, %v2662_v26  ;;  %v923_v19 = vmul.f32 1.442695, %v916_v36 }
 0x163   : > { %1628 = vpow2.f32 %v897_v31  ;;  %v820_v9 = vsub.f32 %v3462_v14, %v2671_v28  ;;  %v833_v55 = vmul.f32 1.442695, %v829_v4  ;;  %v817_v5 = vsub.f32 %v2460_v48, %v2752_v35 }
 0x164   : > { %1630 = vpow2.f32 %v899_v23  ;;  %v835_v21 = vmul.f32 1.442695, %v830_v18  ;;  %v818_v44 = vsub.f32 %v2487_v58, %v2759_v13  ;;  %v841_v28 = vsub.f32 %v2547_v10, %v2752_v35  ;;  %v2807_v20 = vpop.permute.xlu0 %1105 }
 0x165   : > { %1632 = vpow2.f32 %v909_v43  ;;  %v825_v40 = vmul.f32 1.442695, %v819_v0  ;;  %v842_v48 = vsub.f32 %v2550_v25, %v2759_v13  ;;  %v827_v51 = vmul.f32 1.442695, %v820_v9 }
 0x166   : > { %v2781_v47 = vpop.eup %1608  ;;  %1634 = vpow2.f32 %v911_v17  ;;  %v853_v58 = vsub.f32 %v2647_v32, %v2752_v35  ;;  %v821_v6 = vmul.f32 1.442695, %v817_v5  ;;  %v854_v10 = vsub.f32 %v2654_v29, %v2759_v13 }
 0x167   : > { %v2785_v26 = vpop.eup %1610  ;;  %1636 = vpow2.f32 %v921_v2  ;;  %v823_v27 = vmul.f32 1.442695, %v818_v44  ;;  %v845_v25 = vmul.f32 1.442695, %v841_v28  ;;  %v865_v31 = vsub.f32 %v2677_v11, %v2752_v35 }
 0x168   : > { %v2789_v24 = vpop.eup %1612  ;;  %1638 = vpow2.f32 %v923_v19  ;;  %v847_v23 = vmul.f32 1.442695, %v842_v48  ;;  %v866_v36 = vsub.f32 %v2683_v50, %v2759_v13  ;;  %v857_v29 = vmul.f32 1.442695, %v853_v58  ;;  %v2825_v19 = vpop.permute.xlu1 %1183 }
 0x169   : > { %v2793_v62 = vpop.eup %1614  ;;  %1640 = vpow2.f32 %v833_v55  ;;  %v877_v4 = vsub.f32 %v2686_v12, %v2752_v35  ;;  %v859_v11 = vmul.f32 1.442695, %v854_v10  ;;  %v878_v18 = vsub.f32 %v2693_v41, %v2759_v13 }
 0x16a   : > { %v2799_v63 = vpop.eup %1616  ;;  %1642 = vpow2.f32 %v835_v21  ;;  %v869_v0 = vmul.f32 1.442695, %v865_v31  ;;  %v889_v50 = vsub.f32 %v2699_v56, %v2752_v35  ;;  %v871_v12 = vmul.f32 1.442695, %v866_v36  ;;  %v2835_v21 = vpop.permute.xlu0 %1109 }
 0x16b   : > { %v2803_v38 = vpop.eup %1618  ;;  %1644 = vpow2.f32 %v825_v40  ;;  %v890_v9 = vsub.f32 %v2707_v46, %v2759_v13  ;;  %v881_v41 = vmul.f32 1.442695, %v877_v4  ;;  %v901_v5 = vsub.f32 %v2719_v1, %v2752_v35 }
 0x16c   : > { %v2809_v32 = vpop.eup %1620  ;;  %1646 = vpow2.f32 %v827_v51  ;;  %v883_v56 = vmul.f32 1.442695, %v878_v18  ;;  %v902_v28 = vsub.f32 %v2727_v33, %v2759_v13  ;;  %v893_v46 = vmul.f32 1.442695, %v889_v50 }
 0x16d   : > { %v2813_v43 = vpop.eup %1622  ;;  %1648 = vpow2.f32 %v821_v6  ;;  %v913_v48 = vsub.f32 %v2734_v34, %v2752_v35  ;;  %v895_v1 = vmul.f32 1.442695, %v890_v9  ;;  %v914_v58 = vsub.f32 %v2741_v16, %v2759_v13 }
 0x16e   : > { %v2817_v17 = vpop.eup %1624  ;;  %1650 = vpow2.f32 %v823_v27  ;;  %v905_v10 = vmul.f32 1.442695, %v901_v5  ;;  %v2851_v27 = vpop.permute.xlu1 %1223 }
 0x16f   : > { %v2821_v2 = vpop.eup %1626  ;;  %1652 = vpow2.f32 %v845_v25  ;;  %v907_v25 = vmul.f32 1.442695, %v902_v28  ;;  %v917_v34 = vmul.f32 1.442695, %v913_v48  ;;  %v2857_v35 = vpop.permute.xlu0 %1177  ;;  %v919_v16 = vmul.f32 1.442695, %v914_v58 }
 0x170   : > { %v2827_v14 = vpop.eup %1628  ;;  %1654 = vpow2.f32 %v847_v23 }
 0x171   : > { %3463 = vst [vmem:[#allocation23_spill] sm:$0xff] %v2827_v14  ;;  %v2831_v55 = vpop.eup %1630  ;;  %1656 = vpow2.f32 %v857_v29 }
 0x172   : > { %3464 = vst [vmem:[#allocation24_spill] sm:$0xff] %v2831_v55  ;;  %v2837_v44 = vpop.eup %1632  ;;  %1658 = vpow2.f32 %v859_v11  ;;  %v2874_v50 = vpop.permute.xlu1 %1227 }
 0x173   : > { %3465 = vst [vmem:[#allocation35_spill] sm:$0xff] %v2837_v44  ;;  %v2841_v40 = vpop.eup %1634  ;;  %1660 = vpow2.f32 %v869_v0 }
 0x174   : > { %3466 = vst [vmem:[#allocation41_spill] sm:$0xff] %v2841_v40  ;;  %v2845_v51 = vpop.eup %1636  ;;  %1662 = vpow2.f32 %v871_v12 }
 0x175   : > { %3467 = vst [vmem:[#allocation42_spill] sm:$0xff] %v2845_v51  ;;  %v2849_v6 = vpop.eup %1638  ;;  %1664 = vpow2.f32 %v881_v41 }
 0x176   : > { %3468 = vst [vmem:[#allocation43_spill] sm:$0xff] %v2849_v6  ;;  %v2853_v33 = vpop.eup %1640  ;;  %1666 = vpow2.f32 %v883_v56  ;;  %v1268_v59 = vpop.permute.xlu1 %1267 }
 0x177   : > { %v2855_v31 = vpop.eup %1642  ;;  %1668 = vpow2.f32 %v893_v46  ;;  %v2885_v46 = vpop.permute.xlu0 %1181 }
 0x178   : > { %v2859_v23 = vpop.eup %1644  ;;  %1670 = vpow2.f32 %v895_v1 }
 0x179   : > { %v2861_v13 = vpop.eup %1646  ;;  %1672 = vpow2.f32 %v905_v10  ;;  %v927_v36 = vadd.f32 %v2859_v23, %v2781_v47 }
 0x17a   : > { %v2865_v29 = vpop.eup %1648  ;;  %1674 = vpow2.f32 %v907_v25  ;;  %v928_v4 = vadd.f32 %v2861_v13, %v2785_v26 }
 0x17b   : > { %v2869_v11 = vpop.eup %1650  ;;  %1676 = vpow2.f32 %v917_v34  ;;  %v931_v18 = vadd.f32 %v2789_v24, %v927_v36  ;;  %v925_v0 = vadd.f32 %v2865_v29, %v2853_v33 }
 0x17c   : > { %v2876_v12 = vpop.eup %1652  ;;  %1678 = vpow2.f32 %v919_v16  ;;  %v932_v9 = vadd.f32 %v2793_v62, %v928_v4  ;;  %v926_v41 = vadd.f32 %v2869_v11, %v2855_v31 }
 0x17d   : > { %v2881_v5 = vpop.eup %1654  ;;  %v935_v56 = vadd.f32 %v2799_v63, %v931_v18  ;;  %v929_v28 = vadd.f32 %v2876_v12, %v925_v0 }
 0x17e   : > { %v2887_v48 = vpop.eup %1656  ;;  %v936_v1 = vadd.f32 %v2803_v38, %v932_v9  ;;  %v930_v58 = vadd.f32 %v2881_v5, %v926_v41 }
 0x17f   : > { %v2891_v10 = vpop.eup %1658  ;;  %v939_v25 = vadd.f32 %v2809_v32, %v935_v56  ;;  %v933_v34 = vadd.f32 %v2887_v48, %v929_v28 }
 0x180   : > { %v2895_v16 = vpop.eup %1660  ;;  %v940_v36 = vadd.f32 %v2813_v43, %v936_v1  ;;  %v934_v4 = vadd.f32 %v2891_v10, %v930_v58  ;;  %v1222_v58 = vpop.permute.xlu0 %1221 }
 0x181   : > { %v2899_v18 = vpop.eup %1662  ;;  %v943_v0 = vadd.f32 %v2817_v17, %v939_v25  ;;  %v937_v9 = vadd.f32 %v2895_v16, %v933_v34 }
 0x182   : > { %v2903_v41 = vpop.eup %1664  ;;  %v944_v61 = vadd.f32 %v2821_v2, %v940_v36  ;;  %v938_v56 = vadd.f32 %v2899_v18, %v934_v4 }
 0x183   : > { %v2907_v28 = vpop.eup %1666  ;;  %v947_v8 = vadd.f32 %v2827_v14, %v943_v0  ;;  %v941_v1 = vadd.f32 %v2903_v41, %v937_v9 }
 0x184   : > { %3469 = vst [vmem:[#allocation44_spill] sm:$0xff] %v2907_v28  ;;  %v2911_v60 = vpop.eup %1668  ;;  %v948_v25 = vadd.f32 %v2831_v55, %v944_v61  ;;  %v942_v34 = vadd.f32 %v2907_v28, %v938_v56  ;;  %v1272_v55 = vpop.permute.xlu1 %1271 }
 0x185   : > { %v2915_v7 = vpop.eup %1670  ;;  %v951_v52 = vadd.f32 %v2837_v44, %v947_v8  ;;  %v945_v36 = vadd.f32 %v2911_v60, %v941_v1 }
 0x186   : > { %v2919_v4 = vpop.eup %1672  ;;  %v952_v3 = vadd.f32 %v2841_v40, %v948_v25  ;;  %v946_v0 = vadd.f32 %v2915_v7, %v942_v34  ;;  %v1226_v40 = vpop.permute.xlu0 %1225 }
 0x187   : > { %3470 = vst [vmem:[#allocation45_spill] sm:$0xff] %v2919_v4  ;;  %v2923_v9 = vpop.eup %1674  ;;  %v955_v14 = vadd.f32 %v2845_v51, %v951_v52  ;;  %v949_v61 = vadd.f32 %v2919_v4, %v945_v36  ;;  %v3474_v36 = vld [vmem:[#allocation37_spill] sm:$0xff] }
 0x188   : > { %3471 = vst [vmem:[#allocation46_spill] sm:$0xff] %v2923_v9  ;;  %v2927_v56 = vpop.eup %1676  ;;  %v956_v28 = vadd.f32 %v2849_v6, %v952_v3  ;;  %v950_v8 = vadd.f32 %v2923_v9, %v946_v0  ;;  %v1312_v52 = vpop.permute.xlu1 %1311  ;;  %v2939_v4 = vsel %vm341_vm0, %v3474_v36, %v2604_v42  ;;  %v984_v3 = vsel %vm341_vm0, %v2604_v42, %v3474_v36  ;;  %v3476_v0 = vld [vmem:[#allocation39_spill] sm:$0xff] }
 0x189   : > { %3472 = vst [vmem:[#allocation47_spill] sm:$0xff] %v2927_v56  ;;  %v2931_v1 = vpop.eup %1678  ;;  %1680 = vrcp.f32 %v955_v14  ;;  %v953_v25 = vadd.f32 %v2927_v56, %v949_v61  ;;  %v2955_v61 = vsel %vm341_vm0, %v2664_v37, %v3476_v0  ;;  %v2969_v36 = vsel %vm394_vm1, %v2703_v53, %v2736_v30 }
 0x18a   : > { %3473 = vst [vmem:[#allocation48_spill] sm:$0xff] %v2931_v1  ;;  %1682 = vrcp.f32 %v956_v28  ;;  %v954_v34 = vadd.f32 %v2931_v1, %v950_v8  ;;  %v1266_v14 = vpop.permute.xlu0 %1265  ;;  %v2949_v28 = vsel %vm341_vm0, %v3476_v0, %v2664_v37  ;;  %v3477_v8 = vld [vmem:[#allocation40_spill] sm:$0xff]  ;;  %v2975_v37 = vsel %vm394_vm1, %v2736_v30, %v2703_v53 }
 0x18b   : > { %1684 = vrcp.f32 %v953_v25  ;;  %v3478_v25 = vld [vmem:[#allocation28_spill] sm:$0xff]  ;;  %v2981_v0 = vsel %vm447_vm2, %v2690_v49, %v2723_v22  ;;  %v2999_v53 = vsel %vm447_vm2, %v2779_v39, %v2763_v45  ;;  %v3005_v30 = vsel %vm500_vm3, %v2754_v15, %v2773_v57 }
 0x18c   : > { %1686 = vrcp.f32 %v954_v34  ;;  %v1026_v34 = vsel %vm394_vm1, %v3478_v25, %v3477_v8  ;;  %v1028_v42 = vsel %vm394_vm1, %v3477_v8, %v3478_v25  ;;  %v2987_v8 = vsel %vm447_vm2, %v2723_v22, %v2690_v49 }
 0x18d   : > { %v2993_v25 = vsel %vm447_vm2, %v2763_v45, %v2779_v39  ;;  %v3011_v49 = vsel %vm500_vm3, %v2773_v57, %v2754_v15  ;;  %v3017_v22 = vsel %vm500_vm3, %v2807_v20, %v2835_v21  ;;  %v3023_v45 = vsel %vm500_vm3, %v2835_v21, %v2807_v20  ;;  %v1316_v57 = vpop.permute.xlu1 %1315 }
 0x18e   : > { %v3029_v39 = vsel %vm581_vm4, %v2797_v54, %v2825_v19  ;;  %v3035_v15 = vsel %vm581_vm4, %v2825_v19, %v2797_v54  ;;  %v3041_v1 = vsel %vm581_vm4, %v2857_v35, %v2885_v46  ;;  %v3047_v20 = vsel %vm581_vm4, %v2885_v46, %v2857_v35  ;;  %v1270_v6 = vpop.permute.xlu0 %1269 }
 0x18f   : > { %3479 = vst [vmem:[#allocation37_spill] sm:$0xff] %v3047_v20  ;;  %v3053_v21 = vsel %vm634_vm5, %v2851_v27, %v2874_v50  ;;  %v3059_v54 = vsel %vm634_vm5, %v2874_v50, %v2851_v27  ;;  %v3063_v19 = vsel %vm634_vm5, %v1222_v58, %v1226_v40  ;;  %v3067_v35 = vsel %vm634_vm5, %v1226_v40, %v1222_v58 }
 0x190   : > { %3480 = vst [vmem:[#allocation39_spill] sm:$0xff] %v3053_v21  ;;  %3481 = vst [vmem:[#allocation40_spill] sm:$0xff] %v3059_v54  ;;  %v3071_v46 = vsel %vm687_vm6, %v1268_v59, %v1272_v55  ;;  %v3075_v56 = vsel %vm687_vm6, %v1272_v55, %v1268_v59  ;;  %v3081_v27 = vsel %vm687_vm6, %v1266_v14, %v1270_v6  ;;  %v3494_v54 = vld [vmem:[#allocation17_spill] sm:$0xff] }
 0x191   : > { %3482 = vst [vmem:[#allocation28_spill] sm:$0xff] %v3063_v19  ;;  %3483 = vst [vmem:[#allocation49_spill] sm:$0xff] %v3067_v35  ;;  %v3085_v50 = vsel %vm687_vm6, %v1270_v6, %v1266_v14  ;;  %v3089_v40 = vsel %vm740_vm7, %v1312_v52, %v1316_v57  ;;  %v3093_v58 = vsel %vm740_vm7, %v1316_v57, %v1312_v52  ;;  %v3493_v35 = vld [vmem:[#allocation21_spill] sm:$0xff] }
 0x192   : > { %3484 = vst [vmem:[#allocation50_spill] sm:$0xff] %v3071_v46  ;;  %3485 = vst [vmem:[#allocation51_spill] sm:$0xff] %v3075_v56  ;;  %v3492_v46 = vld [vmem:[#allocation19_spill] sm:$0xff] }
 0x193   : > { %3486 = vst [vmem:[#allocation52_spill] sm:$0xff] %v3081_v27  ;;  %3487 = vst [vmem:[#allocation53_spill] sm:$0xff] %v3085_v50 }
 0x194   : > { %3488 = vst [vmem:[#allocation54_spill] sm:$0xff] %v3089_v40  ;;  %3489 = vst [vmem:[#allocation55_spill] sm:$0xff] %v3093_v58  ;;  %v3491_v40 = vld [vmem:[#allocation20_spill] sm:$0xff] }
 0x196   : > { %v3077_v9 = vpop.eup %1680 }
 0x197   : > { %v3095_v59 = vpop.eup %1682  ;;  %v967_v55 = vmul.f32 %v3077_v9, %v2859_v23  ;;  %v1011_v27 = vmul.f32 %v3077_v9, %v2781_v47  ;;  %v1055_v6 = vmul.f32 %v3077_v9, %v2789_v24  ;;  %v1099_v14 = vmul.f32 %v3077_v9, %v2799_v63  ;;  %v3490_v24 = vld [vmem:[#allocation18_spill] sm:$0xff] }
 0x198   : > { %v3105_v50 = vpop.eup %1684  ;;  %v968_v52 = vmul.f32 %v3095_v59, %v2861_v13  ;;  %v1012_v57 = vmul.f32 %v3095_v59, %v2785_v26  ;;  %v1056_v23 = vmul.f32 %v3095_v59, %v2793_v62  ;;  %v1100_v47 = vmul.f32 %v3095_v59, %v2803_v38 }
 0x199   : > { %v3115_v51 = vpop.eup %1686  ;;  %v971_v58 = vmul.f32 %v967_v55, %v3490_v24  ;;  %v965_v63 = vmul.f32 %v3105_v50, %v2865_v29  ;;  %v1015_v56 = vmul.f32 %v1011_v27, %v3491_v40  ;;  %v1009_v13 = vmul.f32 %v3105_v50, %v2853_v33 }
 0x19a   : > { %v972_v26 = vmul.f32 %v968_v52, %v3492_v46  ;;  %v966_v62 = vmul.f32 %v3115_v51, %v2869_v11  ;;  %v1016_v19 = vmul.f32 %v1012_v57, %v3493_v35  ;;  %v1010_v38 = vmul.f32 %v3115_v51, %v2855_v31 }
 0x19b   : > { %v996_v55 = vrot.slane %v971_v58, %v3494_v54  ;;  %v969_v21 = vmul.f32 %v965_v63, %v3490_v24  ;;  %v1040_v29 = vrot.slane %v1015_v56, %v3494_v54  ;;  %v1013_v27 = vmul.f32 %v1009_v13, %v3491_v40 }
 0x19c   : > { %v1000_v33 = vrot.slane %v972_v26, %v3494_v54  ;;  %v970_v52 = vmul.f32 %v966_v62, %v3492_v46  ;;  %v1044_v44 = vrot.slane %v1016_v19, %v3494_v54  ;;  %v1014_v11 = vmul.f32 %v1010_v38, %v3493_v35  ;;  %v3495_v26 = vld [vmem:[#allocation22_spill] sm:$0xff]  ;;  %v3496_v62 = vld [vmem:[#allocation25_spill] sm:$0xff] }
 0x19d   : > { %v1003_v57 = vmul.f32 %v996_v55, %v984_v3  ;;  %v988_v20 = vrot.slane %v969_v21, %v3494_v54  ;;  %v1047_v31 = vmul.f32 %v1040_v29, %v1028_v42  ;;  %v1032_v58 = vrot.slane %v1013_v27, %v3494_v54 }
 0x19e   : > { %v1004_v24 = vmul.f32 %v1000_v33, %v2939_v4  ;;  %v992_v56 = vrot.slane %v970_v52, %v3494_v54  ;;  %v1048_v63 = vmul.f32 %v1044_v44, %v1026_v34  ;;  %v1036_v40 = vrot.slane %v1014_v11, %v3494_v54 }
 0x19f   : > { %v1001_v13 = vmul.f32 %v988_v20, %v2955_v61  ;;  %v1051_v46 = vadd.f32 %v1047_v31, %v1003_v57  ;;  %v1045_v19 = vmul.f32 %v1032_v58, %v2975_v37  ;;  %v1059_v35 = vmul.f32 %v1055_v6, %v3495_v26  ;;  %v3497_v20 = vld [vmem:[#allocation26_spill] sm:$0xff] }
 0x1a0   : > { %v1002_v3 = vmul.f32 %v992_v56, %v2949_v28  ;;  %v1052_v21 = vadd.f32 %v1048_v63, %v1004_v24  ;;  %v1046_v42 = vmul.f32 %v1036_v40, %v2969_v36  ;;  %v1060_v38 = vmul.f32 %v1056_v23, %v3496_v62  ;;  %v3498_v28 = vld [vmem:[#allocation27_spill] sm:$0xff] }
 0x1a1   : > { %v1049_v4 = vadd.f32 %v1045_v19, %v1001_v13  ;;  %v1084_v55 = vrot.slane %v1059_v35, %v3494_v54  ;;  %v1053_v44 = vmul.f32 %v3105_v50, %v2876_v12  ;;  %v1054_v61 = vmul.f32 %v3115_v51, %v2881_v5 }
 0x1a2   : > { %v1050_v34 = vadd.f32 %v1046_v42, %v1002_v3  ;;  %v1088_v37 = vrot.slane %v1060_v38, %v3494_v54  ;;  %v1103_v6 = vmul.f32 %v1099_v14, %v3497_v20  ;;  %v1104_v29 = vmul.f32 %v1100_v47, %v3498_v28  ;;  %v1688_v42 = vld [vmem:[%s2154_s10 + $0x10] sm:$0xff]  ;;  %v1689_v38 = vld [vmem:[%s2154_s10 + $0x18] sm:$0xff] }
 0x1a3   : > { %v1091_v36 = vmul.f32 %v1084_v55, %v2987_v8  ;;  %v1057_v23 = vmul.f32 %v1053_v44, %v3495_v26  ;;  %v1058_v27 = vmul.f32 %v1054_v61, %v3496_v62  ;;  %v1097_v33 = vmul.f32 %v3105_v50, %v2887_v48  ;;  %v3499_v55 = vld [vmem:[#allocation30_spill] sm:$0xff] }
 0x1a4   : > { %v1092_v12 = vmul.f32 %v1088_v37, %v2981_v0  ;;  %v1128_v5 = vrot.slane %v1103_v6, %v3494_v54  ;;  %v1132_v52 = vrot.slane %v1104_v29, %v3494_v54  ;;  %v1098_v14 = vmul.f32 %v3115_v51, %v2891_v10 }
 0x1a5   : > { %v1095_v11 = vadd.f32 %v1091_v36, %v1051_v46  ;;  %v1076_v47 = vrot.slane %v1057_v23, %v3494_v54  ;;  %v1080_v8 = vrot.slane %v1058_v27, %v3494_v54  ;;  %v1101_v57 = vmul.f32 %v1097_v33, %v3497_v20  ;;  %v1690_v36 = vld [vmem:[%s2154_s10] sm:$0xff]  ;;  %v1691_v27 = vld [vmem:[%s2154_s10 + $0x8] sm:$0xff]  ;;  %s1808_s10 = scalar_lea.vmem %s1807_s13, 1024 }
 0x1a6   : > { %v1096_v31 = vadd.f32 %v1092_v12, %v1052_v21  ;;  %v1135_v58 = vmul.f32 %v1128_v5, %v3011_v49  ;;  %v1136_v48 = vmul.f32 %v1132_v52, %v3005_v30  ;;  %v1102_v0 = vmul.f32 %v1098_v14, %v3498_v28  ;;  %v3501_v28 = vld [vmem:[#allocation44_spill] sm:$0xff]  ;;  %v3502_v5 = vld [vmem:[#allocation23_spill] sm:$0xff]  ;;  %p1810_p13 = scmp.lt.s32.totalorder %s1808_s10, %s1802_s8 }
 0x1a7   : > { %v1089_v24 = vmul.f32 %v1076_v47, %v2999_v53  ;;  %v1090_v56 = vmul.f32 %v1080_v8, %v2993_v25  ;;  %v1120_v10 = vrot.slane %v1101_v57, %v3494_v54  ;;  %v1143_v63 = vmul.f32 %v3077_v9, %v2809_v32  ;;  %v3503_v47 = vld [vmem:[#allocation24_spill] sm:$0xff] }
 0x1a8   : > { %v1139_v40 = vadd.f32 %v1135_v58, %v1095_v11  ;;  %v1140_v13 = vadd.f32 %v1136_v48, %v1096_v31  ;;  %v1124_v46 = vrot.slane %v1102_v0, %v3494_v54  ;;  %v1144_v30 = vmul.f32 %v3095_v59, %v2813_v43  ;;  %v3504_v48 = vld [vmem:[#allocation32_spill] sm:$0xff]  ;;  %p1811_p1 = por %p1810_p13, %p1809_p0 }
 0x1a9   : > { %v1093_v49 = vadd.f32 %v1089_v24, %v1049_v4  ;;  %v1094_v19 = vadd.f32 %v1090_v56, %v1050_v34  ;;  %v1133_v53 = vmul.f32 %v1120_v10, %v3023_v45  ;;  %v1156_v25 = vrot.slane %v1143_v63, %v3494_v54  ;;  %v3505_v63 = vld [vmem:[#allocation33_spill] sm:$0xff] }
 0x1aa   : > { %v1134_v26 = vmul.f32 %v1124_v46, %v3017_v22  ;;  %v1160_v35 = vrot.slane %v1144_v30, %v3494_v54  ;;  %v1171_v32 = vmul.f32 %v3077_v9, %v2817_v17  ;;  %v1172_v3 = vmul.f32 %v3095_v59, %v2821_v2  ;;  %v3500_v17 = vld [vmem:[#allocation31_spill] sm:$0xff]  ;;  %v3506_v30 = vld [vmem:[#allocation37_spill] sm:$0xff]  ;;  %p1812_p5 = pnand %p1811_p1, %p1805_p7 }
 0x1ab   : > { %v1137_v21 = vadd.f32 %v1133_v53, %v1093_v49  ;;  %v1163_v62 = vmul.f32 %v1688_v42, %v1156_v25  ;;  %v1141_v43 = vmul.f32 %v3105_v50, %v2895_v16  ;;  %v1142_v45 = vmul.f32 %v3115_v51, %v2899_v18  ;;  %v3507_v53 = vld [vmem:[#allocation35_spill] sm:$0xff] }
 0x1ac   : > { %v1138_v22 = vadd.f32 %v1134_v26, %v1094_v19  ;;  %v1164_v4 = vmul.f32 %v1689_v38, %v1160_v35  ;;  %v1175_v44 = vmul.f32 %v1171_v32, %v3499_v55  ;;  %v1176_v61 = vmul.f32 %v1172_v3, %v3500_v17  ;;  %v3508_v26 = vld [vmem:[#allocation41_spill] sm:$0xff] }
 0x1ad   : > { %v1167_v34 = vadd.f32 %v1163_v62, %v1139_v40  ;;  %v1148_v2 = vrot.slane %v1141_v43, %v3494_v54  ;;  %v1152_v37 = vrot.slane %v1142_v45, %v3494_v54  ;;  %v1169_v20 = vmul.f32 %v3105_v50, %v2903_v41  ;;  %v3510_v62 = vld [vmem:[#allocation40_spill] sm:$0xff]  ;;  %v3511_v43 = vld [vmem:[#allocation34_spill] sm:$0xff] }
 0x1ae   : > { %v1168_v16 = vadd.f32 %v1164_v4, %v1140_v13  ;;  %v1200_v6 = vrot.slane %v1175_v44, %v3494_v54  ;;  %v1204_v18 = vrot.slane %v1176_v61, %v3494_v54  ;;  %v1170_v29 = vmul.f32 %v3115_v51, %v3501_v28 }
 0x1af   : > { %v1161_v23 = vmul.f32 %v1690_v36, %v1148_v2  ;;  %v1162_v33 = vmul.f32 %v1691_v27, %v1152_v37  ;;  %v1173_v12 = vmul.f32 %v1169_v20, %v3499_v55  ;;  %v1215_v52 = vmul.f32 %v3077_v9, %v3502_v5  ;;  %v3517_v27 = vld [vmem:[#allocation42_spill] sm:$0xff] }
 0x1b0   : > { %v1207_v14 = vmul.f32 %v1200_v6, %v3029_v39  ;;  %v1208_v41 = vmul.f32 %v1204_v18, %v3035_v15  ;;  %v1174_v11 = vmul.f32 %v1170_v29, %v3500_v17  ;;  %v1216_v8 = vmul.f32 %v3095_v59, %v3503_v47  ;;  %v3513_v17 = vld [vmem:[#allocation45_spill] sm:$0xff]  ;;  %v3515_v18 = vld [vmem:[#allocation28_spill] sm:$0xff] }
 0x1b1   : > { %v1165_v57 = vadd.f32 %v1161_v23, %v1137_v21  ;;  %v1166_v31 = vadd.f32 %v1162_v33, %v1138_v22  ;;  %v1192_v58 = vrot.slane %v1173_v12, %v3494_v54  ;;  %v1219_v0 = vmul.f32 %v1215_v52, %v3504_v48  ;;  %v3512_v22 = vld [vmem:[#allocation36_spill] sm:$0xff]  ;;  %v3516_v29 = vld [vmem:[#allocation49_spill] sm:$0xff]  ;;  %v3518_v12 = vld [vmem:[#allocation50_spill] sm:$0xff] }
 0x1b2   : > { %v1211_v24 = vadd.f32 %v1207_v14, %v1167_v34  ;;  %v1212_v56 = vadd.f32 %v1208_v41, %v1168_v16  ;;  %v1196_v10 = vrot.slane %v1174_v11, %v3494_v54  ;;  %v1220_v40 = vmul.f32 %v1216_v8, %v3505_v63  ;;  %v1310_v34 = vpop.permute.xlu0 %1309  ;;  %v3514_v16 = vld [vmem:[#allocation46_spill] sm:$0xff]  ;;  %v3519_v52 = vld [vmem:[#allocation51_spill] sm:$0xff] }
 0x1b3   : > { %v1205_v39 = vmul.f32 %v1192_v58, %v3041_v1  ;;  %v1244_v15 = vrot.slane %v1219_v0, %v3494_v54  ;;  %v1213_v13 = vmul.f32 %v3105_v50, %v2911_v60  ;;  %v1214_v46 = vmul.f32 %v3115_v51, %v2915_v7  ;;  %v3509_v1 = vld [vmem:[#allocation39_spill] sm:$0xff]  ;;  %v3521_v58 = vld [vmem:[#allocation29_spill] sm:$0xff] }
 0x1b4   : > { %v1206_v49 = vmul.f32 %v1196_v10, %v3506_v30  ;;  %v1248_v19 = vrot.slane %v1220_v40, %v3494_v54  ;;  %v1259_v25 = vmul.f32 %v3077_v9, %v3507_v53  ;;  %v1260_v35 = vmul.f32 %v3095_v59, %v3508_v26  ;;  %v3520_v11 = vld [vmem:[#allocation43_spill] sm:$0xff]  ;;  %v3527_v26 = vld [vmem:[#allocation54_spill] sm:$0xff] }
 0x1b5   : > { %v1209_v32 = vadd.f32 %v1205_v39, %v1165_v57  ;;  %v1251_v3 = vmul.f32 %v1244_v15, %v3509_v1  ;;  %v1217_v21 = vmul.f32 %v1213_v13, %v3504_v48  ;;  %v1218_v60 = vmul.f32 %v1214_v46, %v3505_v63  ;;  %v3523_v63 = vld [vmem:[#allocation52_spill] sm:$0xff]  ;;  %v3524_v13 = vld [vmem:[#allocation47_spill] sm:$0xff] }
 0x1b6   : > { %v1210_v42 = vadd.f32 %v1206_v49, %v1166_v31  ;;  %v1252_v7 = vmul.f32 %v1248_v19, %v3510_v62  ;;  %v1263_v45 = vmul.f32 %v1259_v25, %v3511_v43  ;;  %v1264_v38 = vmul.f32 %v1260_v35, %v3512_v22  ;;  %v1314_v15 = vpop.permute.xlu0 %1313  ;;  %v3525_v46 = vld [vmem:[#allocation48_spill] sm:$0xff]  ;;  %v3526_v49 = vld [vmem:[#allocation53_spill] sm:$0xff] }
 0x1b7   : > { %v1255_v4 = vadd.f32 %v1251_v3, %v1211_v24  ;;  %v1236_v55 = vrot.slane %v1217_v21, %v3494_v54  ;;  %v1240_v44 = vrot.slane %v1218_v60, %v3494_v54  ;;  %v1257_v61 = vmul.f32 %v3105_v50, %v3513_v17  ;;  %v3528_v21 = vld [vmem:[#allocation55_spill] sm:$0xff] }
 0x1b8   : > { %v1256_v2 = vadd.f32 %v1252_v7, %v1212_v56  ;;  %v1288_v37 = vrot.slane %v1263_v45, %v3494_v54  ;;  %v1292_v20 = vrot.slane %v1264_v38, %v3494_v54  ;;  %v1258_v6 = vmul.f32 %v3115_v51, %v3514_v16 }
 0x1b9   : > { %v1249_v28 = vmul.f32 %v1236_v55, %v3515_v18  ;;  %v1250_v36 = vmul.f32 %v1240_v44, %v3516_v29  ;;  %v1261_v23 = vmul.f32 %v1257_v61, %v3511_v43  ;;  %v1303_v33 = vmul.f32 %v3077_v9, %v3517_v27  ;;  %v3522_v9 = vld [vmem:[#allocation38_spill] sm:$0xff] }
 0x1ba   : > { %v1295_v5 = vmul.f32 %v1288_v37, %v3518_v12  ;;  %v1296_v14 = vmul.f32 %v1292_v20, %v3519_v52  ;;  %v1262_v41 = vmul.f32 %v1258_v6, %v3512_v22  ;;  %v1304_v47 = vmul.f32 %v3095_v59, %v3520_v11 }
 0x1bb   : > { %v1253_v8 = vadd.f32 %v1249_v28, %v1209_v32  ;;  %v1254_v57 = vadd.f32 %v1250_v36, %v1210_v42  ;;  %v1280_v31 = vrot.slane %v1261_v23, %v3494_v54  ;;  %v1307_v48 = vmul.f32 %v3521_v58, %v1303_v33 }
 0x1bc   : > { %v1299_v0 = vadd.f32 %v1295_v5, %v1255_v4  ;;  %v1300_v24 = vadd.f32 %v1296_v14, %v1256_v2  ;;  %v1284_v56 = vrot.slane %v1262_v41, %v3494_v54  ;;  %v1308_v10 = vmul.f32 %v3522_v9, %v1304_v47 }
 0x1bd   : > { %v1293_v40 = vmul.f32 %v1280_v31, %v3523_v63  ;;  %v1332_v39 = vrot.slane %v1307_v48, %v3494_v54  ;;  %v1301_v59 = vmul.f32 %v3105_v50, %v3524_v13  ;;  %v1302_v30 = vmul.f32 %v3115_v51, %v3525_v46 }
 0x1be   : > { %v1294_v19 = vmul.f32 %v1284_v56, %v3526_v49  ;;  %v1336_v53 = vrot.slane %v1308_v10, %v3494_v54  ;;  %v1317_v50 = vsel %vm740_vm7, %v1310_v34, %v1314_v15  ;;  %v1319_v51 = vsel %vm740_vm7, %v1314_v15, %v1310_v34 }
 0x1bf   : > { %v1297_v25 = vadd.f32 %v1293_v40, %v1253_v8  ;;  %v1339_v35 = vmul.f32 %v1332_v39, %v3527_v26  ;;  %v1305_v32 = vmul.f32 %v3521_v58, %v1301_v59  ;;  %v1306_v1 = vmul.f32 %v3522_v9, %v1302_v30 }
 0x1c0   : > { %v1298_v3 = vadd.f32 %v1294_v19, %v1254_v57  ;;  %v1340_v60 = vmul.f32 %v1336_v53, %v3528_v21 }
 0x1c1   : > { %v1343_v62 = vadd.f32 %v1339_v35, %v1299_v0  ;;  %v1324_v7 = vrot.slane %v1305_v32, %v3494_v54  ;;  %v1328_v43 = vrot.slane %v1306_v1, %v3494_v54 }
 0x1c2   : > { %v1344_v45 = vadd.f32 %v1340_v60, %v1300_v24 }
 0x1c3   : > { %1347 = vst [vmem:[%s310_s14 + $0x10] sm:$0xff] %v1343_v62  ;;  %v1337_v22 = vmul.f32 %v1324_v7, %v1317_v50  ;;  %v1338_v38 = vmul.f32 %v1328_v43, %v1319_v51 }
 0x1c4   : > { %1348 = vst [vmem:[%s310_s14 + $0x18] sm:$0xff] %v1344_v45 }
 0x1c5   : > { %v1341_v4 = vadd.f32 %v1337_v22, %v1297_v25  ;;  %v1342_v55 = vadd.f32 %v1338_v38, %v1298_v3 }
 0x1c7   : > { %1345 = vst [vmem:[%s310_s14] sm:$0xff] %v1341_v4  ;;  %1346 = vst [vmem:[%s310_s14 + $0x8] sm:$0xff] %v1342_v55 }
 0x1c8   : > { %1815 = shalt.err (!%p1812_p5)
}
 0x1c9   : > { %s1816_s24 = scalar_lea.hbm %s3283_s1, 512  ;;  %s1820_s27 = scalar_lea.hbm %s3331_s4, 1024 }
 0x1ca   : > { %p1817_p9 = scmp.ne.s32.totalorder %s3283_s1, %s1816_s24  ;;  %p1821_p11 = scmp.lt.s32.totalorder %s3283_s1, %s3331_s4 }
 0x1cb   : > { %p1822_p12 = scmp.lt.s32.totalorder %s1820_s27, %s1816_s24 }
 0x1cc   : > { %p1818_p10 = pnand %p1817_p9, %p3530_p2 }
 0x1cd   : > { %p1823_p6 = por %p1822_p12, %p1821_p11 }
 0x1ce   : > { %p1819_p8 = pneg %p1818_p10 }
 0x1d0   : > { %p1824_p4 = pnand %p1823_p6, %p1819_p8 }
 0x1d2   : > { %1827 = shalt.err (!%p1824_p4)
}
 0x1d3   : > { %s1891_s25 = smov 256  }
 0x1d4   : > { %1540 = dma.vmem_to_hbm [thread:$0]  (%p3530_p2), %s3278_s23, 512, %s3283_s1, %s1350_s28, %s1891_s25, %s1891_s25, %s1883_s11  }
 0x1d5 PF: > { %s1379_s14 = sand.u32 1, %s1862_s15   ;;  %p3531_p3 = scmp.ne.s32.totalorder %s3411_s5, 0 }
 0x1d6   : > { %p3532_p7 = scmp.ge.s32.totalorder %s1874_s18, 2  ;;  %s1380_s20 = scalar_lea.sflag [#allocation4], %s1379_s14 }
 0x1d8   : > { %p1557_p0 = pnand %p3532_p7, %p3531_p3 }
 0x1da   : > { %p1558_p13 = pneg %p1557_p0 }
 0x1dc   : > { %1857 = dma.done.wait (%p1558_p13), %s1380_s20, 512  }
 0x1dd   : > { %1859 = vsyncadd (%p1558_p13), %s1380_s20, 4294966784  ;;  %s3533_s29 = sld [smem:[#allocation15_spill]]  ;;  %p21_p1 = scmp.ge.s32.totalorder %s1938_s19, 4  }
 0x1de   : > { %s3534_s15 = smov %s1866_s16  ;;  %s3535_s16 = smov %s1870_s17 }
 0x1df   : > { %s3537_s18 = smov %s1938_s19  ;;  %23 = sbr.rel (!%p21_p1) target bundleno = 10 (0xa), region = 110 }
 0x1e3   : > { %s3536_s17 = smov %s3533_s29 }
 0x1e4   :  { %1385 = vsyncpa [#allocation3], 1 }
 0x1e5   :  { %1387 = vsyncpa [#allocation3 + $0x1], 1 }
 0x1e6   :  { %1388 = vsyncpa [#allocation6], 1 }
 0x1e7   :  { %1390 = vsyncpa [#allocation6 + $0x1], 1 }
 0x1e8   :  { %1391 = vsyncpa [#allocation9], 1 }
 0x1e9   :  { %1393 = vsyncpa [#allocation9 + $0x1], 1 }
 0x1ea   :  { %1394 = vsyncpa [#allocation4], 1 }
 0x1eb   :  { %1396 = vsyncpa [#allocation4 + $0x1], 1 }

</bundles_post_ra>
